<compile_context>
chip_gen: v6e
topology: v6e:2x2x1
jax: 0.10.0
libtpu: 0.0.40
codegen_flags: <defaults>
</compile_context>

<pallas_src>
import jax
import jax.numpy as jnp
from jax.experimental import pallas as pl
from jax.experimental.pallas import tpu as pltpu


def _round_up(v, m):
    return ((v + m - 1) // m) * m


def _vmem_budget():
    """(working-set budget, vmem_limit_bytes) derived from the actual chip."""
    try:
        cap = int(pltpu.get_tpu_info().vmem_capacity_bytes)
    except Exception:
        cap = 64 * 1024 * 1024  # conservative default (v7x-sized VMEM)
    budget = min(cap * 2 // 5, 48 * 1024 * 1024)   # ~25 MiB on v7x, 48 MiB on v5e/v6e
    limit = min(cap - (8 << 20), budget + (16 << 20))
    limit = max(int(limit), 32 << 20)
    return budget, limit


def _pick_th(N, H, Wp, Cin, Cout, in_isz, out_isz, budget):
    """Pick the output-row band height th (divisor of H).

    Constraints: tile = th*Wp must be a multiple of 128 or th == H (lane-dense,
    legal BlockSpec); the full per-step working set must fit the VMEM budget;
    prefer at least 2 total grid steps so both v7x TensorCores get work.
    """

    def working_set(th):
        tile = th * Wp
        lb = _round_up((th + 2) * Wp + 2, 128)        # halo band length (+slack)
        ws = (2 * Cin * lb * in_isz                   # double-buffered input band
              + 2 * Cout * tile * out_isz             # double-buffered output block
              + 2 * 9 * Cout * Cin * in_isz           # folded weights (worst case 2 bufs)
              + 2 * Cout * 4                          # folded BN shift
              + Cout * tile * 4                       # f32 accumulator
              + 2 * Cin * tile * in_isz)              # tap-view temporaries (estimate)
        return ws, tile, lb

    cands = [d for d in range(H, 0, -1)
             if H % d == 0 and (d == H or (d * Wp) % 128 == 0)]
    fits = [d for d in cands if working_set(d)[0] <= budget]
    if fits:
        th = fits[0]
        if N * (H // th) < 2:                          # megacore balance (v7x: 2 TCs)
            better = [d for d in fits if N * (H // d) >= 2]
            if better:
                th = better[0]
    else:
        # Best effort; see TODO about a Cin-reduction grid axis for huge layers.
        th = cands[-1]
    _, tile, lb = working_set(th)
    return th, tile, lb


def _conv3x3_bn_relu(xpad_flat, w, b, gamma, beta, mean, var, *, H, W,
                     compute_dtype, out_dtype, eps=1e-5):
    """Fused Conv2d(3x3, pad=1) + BatchNorm2d (inference) + ReLU.

    xpad_flat: (N, Cin, (H+2)*(W+2)) zero-ring-padded plane, row-major flat.
    Returns:   (N, Cout, H*(W+2)); columns >= W of each (W+2)-wide virtual row
               are junk and are dropped by the caller.
    """
    N, Cin, S = xpad_flat.shape
    Wp = W + 2
    assert S == (H + 2) * Wp
    Cout = w.shape[0]

    # Fold conv bias + inference BN into the weights / a per-channel shift.
    scale = gamma * jax.lax.rsqrt(var + eps)                      # (Cout,)
    w9 = (jnp.transpose(w, (2, 3, 0, 1)).reshape(9, Cout, Cin)
          * scale[None, :, None]).astype(compute_dtype)           # (9, Cout, Cin)
    shift = ((b - mean) * scale + beta).reshape(Cout, 1).astype(jnp.float32)

    in_isz = jnp.dtype(compute_dtype).itemsize
    out_isz = jnp.dtype(out_dtype).itemsize
    budget, vmem_limit = _vmem_budget()
    th, tile, Lb = _pick_th(N, H, Wp, Cin, Cout, in_isz, out_isz, budget)
    nb = H // th

    # Halo row bands of the padded flat plane (fuses with the pad/cast pass;
    # ~ (1 + 2/th)x the activation, NOT 9x like im2col).
    xp = xpad_flat.astype(compute_dtype)
    need = (nb - 1) * th * Wp + Lb
    if need > S:
        xp = jnp.pad(xp, ((0, 0), (0, 0), (0, need - S)))
    bands = jnp.stack(
        [xp[:, :, j * th * Wp: j * th * Wp + Lb] for j in range(nb)],
        axis=1)                                                   # (N, nb, Cin, Lb)

    def kernel(xb_ref, w_ref, s_ref, o_ref):
        # xb_ref: (Cin, Lb)   halo band (flattened padded rows)
        # w_ref : (9, Cout, Cin) BN-folded weights
        # s_ref : (Cout, 1)   BN-folded bias/shift (f32)
        # o_ref : (Cout, tile) lane-dense output band (NCHW order)
        acc = None
        for t in range(9):
            dy, dx = divmod(t, 3)
            view = xb_ref[:, pl.ds(dy * Wp + dx, tile)]           # (Cin, tile)
            d = jnp.dot(w_ref[t], view, preferred_element_type=jnp.float32)
            acc = d if acc is None else acc + d
        o_ref[...] = jnp.maximum(acc + s_ref[...], 0.0).astype(o_ref.dtype)

    def build_call(single_buffer_invariants):
        pm = ({"pipeline_mode": pl.Buffered(1)}
              if single_buffer_invariants else {})
        return pl.pallas_call(
            kernel,
            out_shape=jax.ShapeDtypeStruct((N, Cout, H * Wp), out_dtype),
            grid_spec=pltpu.PrefetchScalarGridSpec(
                num_scalar_prefetch=0,
                grid=(N, nb),
                in_specs=[
                    pl.BlockSpec((None, None, Cin, Lb),
                                 lambda n, j: (n, j, 0, 0)),
                    pl.BlockSpec((9, Cout, Cin), lambda n, j: (0, 0, 0), **pm),
                    pl.BlockSpec((Cout, 1), lambda n, j: (0, 0), **pm),
                ],
                out_specs=pl.BlockSpec((None, Cout, tile),
                                       lambda n, j: (n, 0, j)),
            ),
            compiler_params=pltpu.CompilerParams(
                dimension_semantics=("parallel", "parallel"),
                vmem_limit_bytes=vmem_limit),
        )

    try:
        # Grid-invariant weight/shift blocks single-buffered to save VMEM.
        return build_call(True)(bands, w9, shift)
    except Exception:
        # Fallback: default double-buffering (already accounted in the budget).
        return build_call(False)(bands, w9, shift)


def double_conv_forward(x, params, compute_dtype=None):
    """Pallas implementation of DoubleConv.forward (NCHW, inference BN)."""
    N, Cin, H, W = x.shape
    Wp = W + 2
    Cout = params["w1"].shape[0]
    if compute_dtype is None:
        compute_dtype = x.dtype

    def ring_pad_flat(t):
        tp = jnp.pad(t, ((0, 0), (0, 0), (1, 1), (1, 1)))
        return tp.reshape(t.shape[0], t.shape[1], (H + 2) * Wp)

    y = _conv3x3_bn_relu(ring_pad_flat(x), params["w1"], params["b1"],
                         params["g1"], params["beta1"], params["m1"],
                         params["v1"], H=H, W=W,
                         compute_dtype=compute_dtype, out_dtype=compute_dtype)
    y = y.reshape(N, Cout, H, Wp)[:, :, :, :W]          # drop the 2 junk columns

    z = _conv3x3_bn_relu(ring_pad_flat(y), params["w2"], params["b2"],
                         params["g2"], params["beta2"], params["m2"],
                         params["v2"], H=H, W=W,
                         compute_dtype=compute_dtype, out_dtype=x.dtype)
    return z.reshape(N, Cout, H, Wp)[:, :, :, :W]


def _ref_conv_bn_relu(x, w, b, gamma, beta, mean, var, eps=1e-5):
    y = jax.lax.conv_general_dilated(
        x, w, window_strides=(1, 1), padding=((1, 1), (1, 1)),
        dimension_numbers=("NCHW", "OIHW", "NCHW"))
    y = y + b.reshape(1, -1, 1, 1)
    y = (y - mean.reshape(1, -1, 1, 1)) * jax.lax.rsqrt(
        var.reshape(1, -1, 1, 1) + eps) * gamma.reshape(1, -1, 1, 1) \
        + beta.reshape(1, -1, 1, 1)
    return jnp.maximum(y, 0.0)


if __name__ == "__main__":
    key = jax.random.PRNGKey(0)
    ks = jax.random.split(key, 13)

    N, Cin, Cout, H, W = 2, 4, 8, 16, 16
    x = jax.random.normal(ks[0], (N, Cin, H, W), dtype=jnp.float32)

    params = {
        "w1": jax.random.normal(ks[1], (Cout, Cin, 3, 3), jnp.float32) * 0.1,
        "b1": jax.random.normal(ks[2], (Cout,), jnp.float32) * 0.1,
        "g1": 1.0 + 0.1 * jax.random.normal(ks[3], (Cout,), jnp.float32),
        "beta1": 0.1 * jax.random.normal(ks[4], (Cout,), jnp.float32),
        "m1": 0.05 * jax.random.normal(ks[5], (Cout,), jnp.float32),
        "v1": 1.0 + 0.1 * jnp.abs(jax.random.normal(ks[6], (Cout,), jnp.float32)),
        "w2": jax.random.normal(ks[7], (Cout, Cout, 3, 3), jnp.float32) * 0.1,
        "b2": jax.random.normal(ks[8], (Cout,), jnp.float32) * 0.1,
        "g2": 1.0 + 0.1 * jax.random.normal(ks[9], (Cout,), jnp.float32),
        "beta2": 0.1 * jax.random.normal(ks[10], (Cout,), jnp.float32),
        "m2": 0.05 * jax.random.normal(ks[11], (Cout,), jnp.float32),
        "v2": 1.0 + 0.1 * jnp.abs(jax.random.normal(ks[12], (Cout,), jnp.float32)),
    }

    # f32 path: strict check against the XLA reference.
    out = jax.block_until_ready(double_conv_forward(x, params))
    assert out.shape == (N, Cout, H, W), out.shape

    ref = _ref_conv_bn_relu(x, params["w1"], params["b1"], params["g1"],
                            params["beta1"], params["m1"], params["v1"])
    ref = _ref_conv_bn_relu(ref, params["w2"], params["b2"], params["g2"],
                            params["beta2"], params["m2"], params["v2"])
    assert jnp.allclose(out, ref, atol=1e-4, rtol=1e-4), \
        float(jnp.max(jnp.abs(out - ref)))

    # bf16 MXU-operand path (perf-review item): operands bf16, accum/epilogue f32.
    out_bf16 = jax.block_until_ready(
        double_conv_forward(x, params, compute_dtype=jnp.bfloat16))
    assert out_bf16.shape == (N, Cout, H, W)
    assert jnp.allclose(out_bf16, ref, atol=5e-2, rtol=5e-2), \
        float(jnp.max(jnp.abs(out_bf16 - ref)))

    print("KERNEL_OK")
</pallas_src>

<mosaic_0001>
module attributes {stable_mosaic.version = 11 : i64} {
  func.func @kernel(%arg0: i32, %arg1: i32, %arg2: memref<1x1x4x384xf32, #tpu.memory_space<vmem>>, %arg3: memref<9x8x4xf32, #tpu.memory_space<vmem>>, %arg4: memref<8x1xf32, #tpu.memory_space<vmem>>, %arg5: memref<1x8x288xf32, #tpu.memory_space<vmem>>) attributes {dimension_semantics = [#tpu.dimension_semantics<parallel>, #tpu.dimension_semantics<parallel>], iteration_bounds = array<i64: 2, 1>, scalar_prefetch = 0 : i64, scratch_operands = 0 : i64, tpu.core_type = #tpu.core_type<tc>, window_params = [{transform_indices = @transform_0, window_bounds = array<i64: 1, 1, 4, 384>}, {pipeline_mode = #tpu.pipeline_mode<synchronous>, transform_indices = @transform_1, window_bounds = array<i64: 9, 8, 4>}, {pipeline_mode = #tpu.pipeline_mode<synchronous>, transform_indices = @transform_2, window_bounds = array<i64: 8, 1>}, {transform_indices = @transform_3, window_bounds = array<i64: 1, 8, 288>}]} {
    %c0 = arith.constant 0 : index
    %c0_0 = arith.constant 0 : index
    %c0_1 = arith.constant 0 : index
    %c0_2 = arith.constant 0 : index
    %0 = vector.load %arg2[%c0, %c0_0, %c0_1, %c0_2] : memref<1x1x4x384xf32, #tpu.memory_space<vmem>>, vector<1x1x4x288xf32>
    %1 = vector.shape_cast %0 : vector<1x1x4x288xf32> to vector<4x288xf32>
    %c0_3 = arith.constant 0 : index
    %c0_4 = arith.constant 0 : index
    %c0_5 = arith.constant 0 : index
    %2 = vector.load %arg3[%c0_3, %c0_4, %c0_5] : memref<9x8x4xf32, #tpu.memory_space<vmem>>, vector<1x8x4xf32>
    %3 = vector.shape_cast %2 : vector<1x8x4xf32> to vector<8x4xf32>
    %cst = arith.constant dense<0.000000e+00> : vector<8x288xf32>
    %4 = tpu.matmul %3, %1, %cst {dimension_numbers = #tpu.dot_dimension_numbers<[1], [0], [0], [1], [0, 0, 1, 1], [], []>} : vector<8x4xf32>, vector<4x288xf32>, vector<8x288xf32> -> vector<8x288xf32>
    %c0_6 = arith.constant 0 : index
    %c0_7 = arith.constant 0 : index
    %c0_8 = arith.constant 0 : index
    %c1 = arith.constant 1 : index
    %5 = vector.load %arg2[%c0_6, %c0_7, %c0_8, %c1] : memref<1x1x4x384xf32, #tpu.memory_space<vmem>>, vector<1x1x4x288xf32>
    %6 = vector.shape_cast %5 : vector<1x1x4x288xf32> to vector<4x288xf32>
    %c1_9 = arith.constant 1 : index
    %c0_10 = arith.constant 0 : index
    %c0_11 = arith.constant 0 : index
    %7 = vector.load %arg3[%c1_9, %c0_10, %c0_11] : memref<9x8x4xf32, #tpu.memory_space<vmem>>, vector<1x8x4xf32>
    %8 = vector.shape_cast %7 : vector<1x8x4xf32> to vector<8x4xf32>
    %cst_12 = arith.constant dense<0.000000e+00> : vector<8x288xf32>
    %9 = tpu.matmul %8, %6, %cst_12 {dimension_numbers = #tpu.dot_dimension_numbers<[1], [0], [0], [1], [0, 0, 1, 1], [], []>} : vector<8x4xf32>, vector<4x288xf32>, vector<8x288xf32> -> vector<8x288xf32>
    %10 = arith.addf %4, %9 : vector<8x288xf32>
    %c0_13 = arith.constant 0 : index
    %c0_14 = arith.constant 0 : index
    %c0_15 = arith.constant 0 : index
    %c2 = arith.constant 2 : index
    %11 = vector.load %arg2[%c0_13, %c0_14, %c0_15, %c2] : memref<1x1x4x384xf32, #tpu.memory_space<vmem>>, vector<1x1x4x288xf32>
    %12 = vector.shape_cast %11 : vector<1x1x4x288xf32> to vector<4x288xf32>
    %c2_16 = arith.constant 2 : index
    %c0_17 = arith.constant 0 : index
    %c0_18 = arith.constant 0 : index
    %13 = vector.load %arg3[%c2_16, %c0_17, %c0_18] : memref<9x8x4xf32, #tpu.memory_space<vmem>>, vector<1x8x4xf32>
    %14 = vector.shape_cast %13 : vector<1x8x4xf32> to vector<8x4xf32>
    %cst_19 = arith.constant dense<0.000000e+00> : vector<8x288xf32>
    %15 = tpu.matmul %14, %12, %cst_19 {dimension_numbers = #tpu.dot_dimension_numbers<[1], [0], [0], [1], [0, 0, 1, 1], [], []>} : vector<8x4xf32>, vector<4x288xf32>, vector<8x288xf32> -> vector<8x288xf32>
    %16 = arith.addf %10, %15 : vector<8x288xf32>
    %c0_20 = arith.constant 0 : index
    %c0_21 = arith.constant 0 : index
    %c0_22 = arith.constant 0 : index
    %c18 = arith.constant 18 : index
    %17 = vector.load %arg2[%c0_20, %c0_21, %c0_22, %c18] : memref<1x1x4x384xf32, #tpu.memory_space<vmem>>, vector<1x1x4x288xf32>
    %18 = vector.shape_cast %17 : vector<1x1x4x288xf32> to vector<4x288xf32>
    %c3 = arith.constant 3 : index
    %c0_23 = arith.constant 0 : index
    %c0_24 = arith.constant 0 : index
    %19 = vector.load %arg3[%c3, %c0_23, %c0_24] : memref<9x8x4xf32, #tpu.memory_space<vmem>>, vector<1x8x4xf32>
    %20 = vector.shape_cast %19 : vector<1x8x4xf32> to vector<8x4xf32>
    %cst_25 = arith.constant dense<0.000000e+00> : vector<8x288xf32>
    %21 = tpu.matmul %20, %18, %cst_25 {dimension_numbers = #tpu.dot_dimension_numbers<[1], [0], [0], [1], [0, 0, 1, 1], [], []>} : vector<8x4xf32>, vector<4x288xf32>, vector<8x288xf32> -> vector<8x288xf32>
    %22 = arith.addf %16, %21 : vector<8x288xf32>
    %c0_26 = arith.constant 0 : index
    %c0_27 = arith.constant 0 : index
    %c0_28 = arith.constant 0 : index
    %c19 = arith.constant 19 : index
    %23 = vector.load %arg2[%c0_26, %c0_27, %c0_28, %c19] : memref<1x1x4x384xf32, #tpu.memory_space<vmem>>, vector<1x1x4x288xf32>
    %24 = vector.shape_cast %23 : vector<1x1x4x288xf32> to vector<4x288xf32>
    %c4 = arith.constant 4 : index
    %c0_29 = arith.constant 0 : index
    %c0_30 = arith.constant 0 : index
    %25 = vector.load %arg3[%c4, %c0_29, %c0_30] : memref<9x8x4xf32, #tpu.memory_space<vmem>>, vector<1x8x4xf32>
    %26 = vector.shape_cast %25 : vector<1x8x4xf32> to vector<8x4xf32>
    %cst_31 = arith.constant dense<0.000000e+00> : vector<8x288xf32>
    %27 = tpu.matmul %26, %24, %cst_31 {dimension_numbers = #tpu.dot_dimension_numbers<[1], [0], [0], [1], [0, 0, 1, 1], [], []>} : vector<8x4xf32>, vector<4x288xf32>, vector<8x288xf32> -> vector<8x288xf32>
    %28 = arith.addf %22, %27 : vector<8x288xf32>
    %c0_32 = arith.constant 0 : index
    %c0_33 = arith.constant 0 : index
    %c0_34 = arith.constant 0 : index
    %c20 = arith.constant 20 : index
    %29 = vector.load %arg2[%c0_32, %c0_33, %c0_34, %c20] : memref<1x1x4x384xf32, #tpu.memory_space<vmem>>, vector<1x1x4x288xf32>
    %30 = vector.shape_cast %29 : vector<1x1x4x288xf32> to vector<4x288xf32>
    %c5 = arith.constant 5 : index
    %c0_35 = arith.constant 0 : index
    %c0_36 = arith.constant 0 : index
    %31 = vector.load %arg3[%c5, %c0_35, %c0_36] : memref<9x8x4xf32, #tpu.memory_space<vmem>>, vector<1x8x4xf32>
    %32 = vector.shape_cast %31 : vector<1x8x4xf32> to vector<8x4xf32>
    %cst_37 = arith.constant dense<0.000000e+00> : vector<8x288xf32>
    %33 = tpu.matmul %32, %30, %cst_37 {dimension_numbers = #tpu.dot_dimension_numbers<[1], [0], [0], [1], [0, 0, 1, 1], [], []>} : vector<8x4xf32>, vector<4x288xf32>, vector<8x288xf32> -> vector<8x288xf32>
    %34 = arith.addf %28, %33 : vector<8x288xf32>
    %c0_38 = arith.constant 0 : index
    %c0_39 = arith.constant 0 : index
    %c0_40 = arith.constant 0 : index
    %c36 = arith.constant 36 : index
    %35 = vector.load %arg2[%c0_38, %c0_39, %c0_40, %c36] : memref<1x1x4x384xf32, #tpu.memory_space<vmem>>, vector<1x1x4x288xf32>
    %36 = vector.shape_cast %35 : vector<1x1x4x288xf32> to vector<4x288xf32>
    %c6 = arith.constant 6 : index
    %c0_41 = arith.constant 0 : index
    %c0_42 = arith.constant 0 : index
    %37 = vector.load %arg3[%c6, %c0_41, %c0_42] : memref<9x8x4xf32, #tpu.memory_space<vmem>>, vector<1x8x4xf32>
    %38 = vector.shape_cast %37 : vector<1x8x4xf32> to vector<8x4xf32>
    %cst_43 = arith.constant dense<0.000000e+00> : vector<8x288xf32>
    %39 = tpu.matmul %38, %36, %cst_43 {dimension_numbers = #tpu.dot_dimension_numbers<[1], [0], [0], [1], [0, 0, 1, 1], [], []>} : vector<8x4xf32>, vector<4x288xf32>, vector<8x288xf32> -> vector<8x288xf32>
    %40 = arith.addf %34, %39 : vector<8x288xf32>
    %c0_44 = arith.constant 0 : index
    %c0_45 = arith.constant 0 : index
    %c0_46 = arith.constant 0 : index
    %c37 = arith.constant 37 : index
    %41 = vector.load %arg2[%c0_44, %c0_45, %c0_46, %c37] : memref<1x1x4x384xf32, #tpu.memory_space<vmem>>, vector<1x1x4x288xf32>
    %42 = vector.shape_cast %41 : vector<1x1x4x288xf32> to vector<4x288xf32>
    %c7 = arith.constant 7 : index
    %c0_47 = arith.constant 0 : index
    %c0_48 = arith.constant 0 : index
    %43 = vector.load %arg3[%c7, %c0_47, %c0_48] : memref<9x8x4xf32, #tpu.memory_space<vmem>>, vector<1x8x4xf32>
    %44 = vector.shape_cast %43 : vector<1x8x4xf32> to vector<8x4xf32>
    %cst_49 = arith.constant dense<0.000000e+00> : vector<8x288xf32>
    %45 = tpu.matmul %44, %42, %cst_49 {dimension_numbers = #tpu.dot_dimension_numbers<[1], [0], [0], [1], [0, 0, 1, 1], [], []>} : vector<8x4xf32>, vector<4x288xf32>, vector<8x288xf32> -> vector<8x288xf32>
    %46 = arith.addf %40, %45 : vector<8x288xf32>
    %c0_50 = arith.constant 0 : index
    %c0_51 = arith.constant 0 : index
    %c0_52 = arith.constant 0 : index
    %c38 = arith.constant 38 : index
    %47 = vector.load %arg2[%c0_50, %c0_51, %c0_52, %c38] : memref<1x1x4x384xf32, #tpu.memory_space<vmem>>, vector<1x1x4x288xf32>
    %48 = vector.shape_cast %47 : vector<1x1x4x288xf32> to vector<4x288xf32>
    %c8 = arith.constant 8 : index
    %c0_53 = arith.constant 0 : index
    %c0_54 = arith.constant 0 : index
    %49 = vector.load %arg3[%c8, %c0_53, %c0_54] : memref<9x8x4xf32, #tpu.memory_space<vmem>>, vector<1x8x4xf32>
    %50 = vector.shape_cast %49 : vector<1x8x4xf32> to vector<8x4xf32>
    %cst_55 = arith.constant dense<0.000000e+00> : vector<8x288xf32>
    %51 = tpu.matmul %50, %48, %cst_55 {dimension_numbers = #tpu.dot_dimension_numbers<[1], [0], [0], [1], [0, 0, 1, 1], [], []>} : vector<8x4xf32>, vector<4x288xf32>, vector<8x288xf32> -> vector<8x288xf32>
    %52 = arith.addf %46, %51 : vector<8x288xf32>
    %c0_56 = arith.constant 0 : index
    %c0_57 = arith.constant 0 : index
    %53 = vector.load %arg4[%c0_56, %c0_57] : memref<8x1xf32, #tpu.memory_space<vmem>>, vector<8x1xf32>
    %54 = vector.broadcast %53 : vector<8x1xf32> to vector<8x288xf32>
    %55 = arith.addf %52, %54 : vector<8x288xf32>
    %cst_58 = arith.constant 0.000000e+00 : f32
    %56 = vector.broadcast %cst_58 : f32 to vector<8x288xf32>
    %57 = arith.maximumf %55, %56 : vector<8x288xf32>
    %c0_59 = arith.constant 0 : index
    %c0_60 = arith.constant 0 : index
    %c0_61 = arith.constant 0 : index
    %58 = vector.load %arg5[%c0_59, %c0_60, %c0_61] : memref<1x8x288xf32, #tpu.memory_space<vmem>>, vector<1x8x288xf32>
    %59 = vector.shape_cast %58 : vector<1x8x288xf32> to vector<8x288xf32>
    %60 = vector.shape_cast %57 : vector<8x288xf32> to vector<1x8x288xf32>
    tpu.vector_store %arg5[%c0_59, %c0_60, %c0_61], %60 {strides = array<i32>} : memref<1x8x288xf32, #tpu.memory_space<vmem>>, vector<1x8x288xf32>,
    return
  }
  func.func @transform_0(%arg0: i32, %arg1: i32) -> (i32, i32, i32, i32) {
    %c0_i32 = arith.constant 0 : i32
    %c0_i32_0 = arith.constant 0 : i32
    %c0_i32_1 = arith.constant 0 : i32
    return %arg0, %arg1, %c0_i32, %c0_i32_0 : i32, i32, i32, i32
  }
  func.func @transform_1(%arg0: i32, %arg1: i32) -> (i32, i32, i32) {
    %c0_i32 = arith.constant 0 : i32
    %c0_i32_0 = arith.constant 0 : i32
    %c0_i32_1 = arith.constant 0 : i32
    %c0_i32_2 = arith.constant 0 : i32
    return %c0_i32, %c0_i32_0, %c0_i32_1 : i32, i32, i32
  }
  func.func @transform_2(%arg0: i32, %arg1: i32) -> (i32, i32) {
    %c0_i32 = arith.constant 0 : i32
    %c0_i32_0 = arith.constant 0 : i32
    %c0_i32_1 = arith.constant 0 : i32
    return %c0_i32, %c0_i32_0 : i32, i32
  }
  func.func @transform_3(%arg0: i32, %arg1: i32) -> (i32, i32, i32) {
    %c0_i32 = arith.constant 0 : i32
    %c0_i32_0 = arith.constant 0 : i32
    return %arg0, %c0_i32, %arg1 : i32, i32, i32
  }
}

module attributes {stable_mosaic.version = 11 : i64} {
  func.func @kernel(%arg0: i32, %arg1: i32, %arg2: memref<1x1x4x384xf32, #tpu.memory_space<vmem>>, %arg3: memref<9x8x4xf32, #tpu.memory_space<vmem>>, %arg4: memref<8x1xf32, #tpu.memory_space<vmem>>, %arg5: memref<1x8x288xf32, #tpu.memory_space<vmem>>) attributes {dimension_semantics = [#tpu.dimension_semantics<parallel>, #tpu.dimension_semantics<parallel>], iteration_bounds = array<i64: 2, 1>, scalar_prefetch = 0 : i64, scratch_operands = 0 : i64, tpu.core_type = #tpu.core_type<tc>, window_params = [{transform_indices = @transform_0, window_bounds = array<i64: 1, 1, 4, 384>}, {pipeline_mode = #tpu.pipeline_mode<synchronous>, transform_indices = @transform_1, window_bounds = array<i64: 9, 8, 4>}, {pipeline_mode = #tpu.pipeline_mode<synchronous>, transform_indices = @transform_2, window_bounds = array<i64: 8, 1>}, {transform_indices = @transform_3, window_bounds = array<i64: 1, 8, 288>}]} {
    %c0 = arith.constant 0 : index
    %c0_0 = arith.constant 0 : index
    %c0_1 = arith.constant 0 : index
    %c0_2 = arith.constant 0 : index
    %0 = vector.load %arg2[%c0, %c0_0, %c0_1, %c0_2] : memref<1x1x4x384xf32, #tpu.memory_space<vmem>>, vector<1x1x4x288xf32>
    %1 = vector.shape_cast %0 : vector<1x1x4x288xf32> to vector<4x288xf32>
    %c0_3 = arith.constant 0 : index
    %c0_4 = arith.constant 0 : index
    %c0_5 = arith.constant 0 : index
    %2 = vector.load %arg3[%c0_3, %c0_4, %c0_5] : memref<9x8x4xf32, #tpu.memory_space<vmem>>, vector<1x8x4xf32>
    %3 = vector.shape_cast %2 : vector<1x8x4xf32> to vector<8x4xf32>
    %cst = arith.constant dense<0.000000e+00> : vector<8x288xf32>
    %4 = tpu.matmul %3, %1, %cst {dimension_numbers = #tpu.dot_dimension_numbers<[1], [0], [0], [1], [0, 0, 1, 1], [], []>} : vector<8x4xf32>, vector<4x288xf32>, vector<8x288xf32> -> vector<8x288xf32>
    %c0_6 = arith.constant 0 : index
    %c0_7 = arith.constant 0 : index
    %c0_8 = arith.constant 0 : index
    %c1 = arith.constant 1 : index
    %5 = vector.load %arg2[%c0_6, %c0_7, %c0_8, %c1] : memref<1x1x4x384xf32, #tpu.memory_space<vmem>>, vector<1x1x4x288xf32>
    %6 = vector.shape_cast %5 : vector<1x1x4x288xf32> to vector<4x288xf32>
    %c1_9 = arith.constant 1 : index
    %c0_10 = arith.constant 0 : index
    %c0_11 = arith.constant 0 : index
    %7 = vector.load %arg3[%c1_9, %c0_10, %c0_11] : memref<9x8x4xf32, #tpu.memory_space<vmem>>, vector<1x8x4xf32>
    %8 = vector.shape_cast %7 : vector<1x8x4xf32> to vector<8x4xf32>
    %cst_12 = arith.constant dense<0.000000e+00> : vector<8x288xf32>
    %9 = tpu.matmul %8, %6, %cst_12 {dimension_numbers = #tpu.dot_dimension_numbers<[1], [0], [0], [1], [0, 0, 1, 1], [], []>} : vector<8x4xf32>, vector<4x288xf32>, vector<8x288xf32> -> vector<8x288xf32>
    %10 = arith.addf %4, %9 : vector<8x288xf32>
    %c0_13 = arith.constant 0 : index
    %c0_14 = arith.constant 0 : index
    %c0_15 = arith.constant 0 : index
    %c2 = arith.constant 2 : index
    %11 = vector.load %arg2[%c0_13, %c0_14, %c0_15, %c2] : memref<1x1x4x384xf32, #tpu.memory_space<vmem>>, vector<1x1x4x288xf32>
    %12 = vector.shape_cast %11 : vector<1x1x4x288xf32> to vector<4x288xf32>
    %c2_16 = arith.constant 2 : index
    %c0_17 = arith.constant 0 : index
    %c0_18 = arith.constant 0 : index
    %13 = vector.load %arg3[%c2_16, %c0_17, %c0_18] : memref<9x8x4xf32, #tpu.memory_space<vmem>>, vector<1x8x4xf32>
    %14 = vector.shape_cast %13 : vector<1x8x4xf32> to vector<8x4xf32>
    %cst_19 = arith.constant dense<0.000000e+00> : vector<8x288xf32>
    %15 = tpu.matmul %14, %12, %cst_19 {dimension_numbers = #tpu.dot_dimension_numbers<[1], [0], [0], [1], [0, 0, 1, 1], [], []>} : vector<8x4xf32>, vector<4x288xf32>, vector<8x288xf32> -> vector<8x288xf32>
    %16 = arith.addf %10, %15 : vector<8x288xf32>
    %c0_20 = arith.constant 0 : index
    %c0_21 = arith.constant 0 : index
    %c0_22 = arith.constant 0 : index
    %c18 = arith.constant 18 : index
    %17 = vector.load %arg2[%c0_20, %c0_21, %c0_22, %c18] : memref<1x1x4x384xf32, #tpu.memory_space<vmem>>, vector<1x1x4x288xf32>
    %18 = vector.shape_cast %17 : vector<1x1x4x288xf32> to vector<4x288xf32>
    %c3 = arith.constant 3 : index
    %c0_23 = arith.constant 0 : index
    %c0_24 = arith.constant 0 : index
    %19 = vector.load %arg3[%c3, %c0_23, %c0_24] : memref<9x8x4xf32, #tpu.memory_space<vmem>>, vector<1x8x4xf32>
    %20 = vector.shape_cast %19 : vector<1x8x4xf32> to vector<8x4xf32>
    %cst_25 = arith.constant dense<0.000000e+00> : vector<8x288xf32>
    %21 = tpu.matmul %20, %18, %cst_25 {dimension_numbers = #tpu.dot_dimension_numbers<[1], [0], [0], [1], [0, 0, 1, 1], [], []>} : vector<8x4xf32>, vector<4x288xf32>, vector<8x288xf32> -> vector<8x288xf32>
    %22 = arith.addf %16, %21 : vector<8x288xf32>
    %c0_26 = arith.constant 0 : index
    %c0_27 = arith.constant 0 : index
    %c0_28 = arith.constant 0 : index
    %c19 = arith.constant 19 : index
    %23 = vector.load %arg2[%c0_26, %c0_27, %c0_28, %c19] : memref<1x1x4x384xf32, #tpu.memory_space<vmem>>, vector<1x1x4x288xf32>
    %24 = vector.shape_cast %23 : vector<1x1x4x288xf32> to vector<4x288xf32>
    %c4 = arith.constant 4 : index
    %c0_29 = arith.constant 0 : index
    %c0_30 = arith.constant 0 : index
    %25 = vector.load %arg3[%c4, %c0_29, %c0_30] : memref<9x8x4xf32, #tpu.memory_space<vmem>>, vector<1x8x4xf32>
    %26 = vector.shape_cast %25 : vector<1x8x4xf32> to vector<8x4xf32>
    %cst_31 = arith.constant dense<0.000000e+00> : vector<8x288xf32>
    %27 = tpu.matmul %26, %24, %cst_31 {dimension_numbers = #tpu.dot_dimension_numbers<[1], [0], [0], [1], [0, 0, 1, 1], [], []>} : vector<8x4xf32>, vector<4x288xf32>, vector<8x288xf32> -> vector<8x288xf32>
    %28 = arith.addf %22, %27 : vector<8x288xf32>
    %c0_32 = arith.constant 0 : index
    %c0_33 = arith.constant 0 : index
    %c0_34 = arith.constant 0 : index
    %c20 = arith.constant 20 : index
    %29 = vector.load %arg2[%c0_32, %c0_33, %c0_34, %c20] : memref<1x1x4x384xf32, #tpu.memory_space<vmem>>, vector<1x1x4x288xf32>
    %30 = vector.shape_cast %29 : vector<1x1x4x288xf32> to vector<4x288xf32>
    %c5 = arith.constant 5 : index
    %c0_35 = arith.constant 0 : index
    %c0_36 = arith.constant 0 : index
    %31 = vector.load %arg3[%c5, %c0_35, %c0_36] : memref<9x8x4xf32, #tpu.memory_space<vmem>>, vector<1x8x4xf32>
    %32 = vector.shape_cast %31 : vector<1x8x4xf32> to vector<8x4xf32>
    %cst_37 = arith.constant dense<0.000000e+00> : vector<8x288xf32>
    %33 = tpu.matmul %32, %30, %cst_37 {dimension_numbers = #tpu.dot_dimension_numbers<[1], [0], [0], [1], [0, 0, 1, 1], [], []>} : vector<8x4xf32>, vector<4x288xf32>, vector<8x288xf32> -> vector<8x288xf32>
    %34 = arith.addf %28, %33 : vector<8x288xf32>
    %c0_38 = arith.constant 0 : index
    %c0_39 = arith.constant 0 : index
    %c0_40 = arith.constant 0 : index
    %c36 = arith.constant 36 : index
    %35 = vector.load %arg2[%c0_38, %c0_39, %c0_40, %c36] : memref<1x1x4x384xf32, #tpu.memory_space<vmem>>, vector<1x1x4x288xf32>
    %36 = vector.shape_cast %35 : vector<1x1x4x288xf32> to vector<4x288xf32>
    %c6 = arith.constant 6 : index
    %c0_41 = arith.constant 0 : index
    %c0_42 = arith.constant 0 : index
    %37 = vector.load %arg3[%c6, %c0_41, %c0_42] : memref<9x8x4xf32, #tpu.memory_space<vmem>>, vector<1x8x4xf32>
    %38 = vector.shape_cast %37 : vector<1x8x4xf32> to vector<8x4xf32>
    %cst_43 = arith.constant dense<0.000000e+00> : vector<8x288xf32>
    %39 = tpu.matmul %38, %36, %cst_43 {dimension_numbers = #tpu.dot_dimension_numbers<[1], [0], [0], [1], [0, 0, 1, 1], [], []>} : vector<8x4xf32>, vector<4x288xf32>, vector<8x288xf32> -> vector<8x288xf32>
    %40 = arith.addf %34, %39 : vector<8x288xf32>
    %c0_44 = arith.constant 0 : index
    %c0_45 = arith.constant 0 : index
    %c0_46 = arith.constant 0 : index
    %c37 = arith.constant 37 : index
    %41 = vector.load %arg2[%c0_44, %c0_45, %c0_46, %c37] : memref<1x1x4x384xf32, #tpu.memory_space<vmem>>, vector<1x1x4x288xf32>
    %42 = vector.shape_cast %41 : vector<1x1x4x288xf32> to vector<4x288xf32>
    %c7 = arith.constant 7 : index
    %c0_47 = arith.constant 0 : index
    %c0_48 = arith.constant 0 : index
    %43 = vector.load %arg3[%c7, %c0_47, %c0_48] : memref<9x8x4xf32, #tpu.memory_space<vmem>>, vector<1x8x4xf32>
    %44 = vector.shape_cast %43 : vector<1x8x4xf32> to vector<8x4xf32>
    %cst_49 = arith.constant dense<0.000000e+00> : vector<8x288xf32>
    %45 = tpu.matmul %44, %42, %cst_49 {dimension_numbers = #tpu.dot_dimension_numbers<[1], [0], [0], [1], [0, 0, 1, 1], [], []>} : vector<8x4xf32>, vector<4x288xf32>, vector<8x288xf32> -> vector<8x288xf32>
    %46 = arith.addf %40, %45 : vector<8x288xf32>
    %c0_50 = arith.constant 0 : index
    %c0_51 = arith.constant 0 : index
    %c0_52 = arith.constant 0 : index
    %c38 = arith.constant 38 : index
    %47 = vector.load %arg2[%c0_50, %c0_51, %c0_52, %c38] : memref<1x1x4x384xf32, #tpu.memory_space<vmem>>, vector<1x1x4x288xf32>
    %48 = vector.shape_cast %47 : vector<1x1x4x288xf32> to vector<4x288xf32>
    %c8 = arith.constant 8 : index
    %c0_53 = arith.constant 0 : index
    %c0_54 = arith.constant 0 : index
    %49 = vector.load %arg3[%c8, %c0_53, %c0_54] : memref<9x8x4xf32, #tpu.memory_space<vmem>>, vector<1x8x4xf32>
    %50 = vector.shape_cast %49 : vector<1x8x4xf32> to vector<8x4xf32>
    %cst_55 = arith.constant dense<0.000000e+00> : vector<8x288xf32>
    %51 = tpu.matmul %50, %48, %cst_55 {dimension_numbers = #tpu.dot_dimension_numbers<[1], [0], [0], [1], [0, 0, 1, 1], [], []>} : vector<8x4xf32>, vector<4x288xf32>, vector<8x288xf32> -> vector<8x288xf32>
    %52 = arith.addf %46, %51 : vector<8x288xf32>
    %c0_56 = arith.constant 0 : index
    %c0_57 = arith.constant 0 : index
    %53 = vector.load %arg4[%c0_56, %c0_57] : memref<8x1xf32, #tpu.memory_space<vmem>>, vector<8x1xf32>
    %54 = vector.broadcast %53 : vector<8x1xf32> to vector<8x288xf32>
    %55 = arith.addf %52, %54 : vector<8x288xf32>
    %cst_58 = arith.constant 0.000000e+00 : f32
    %56 = vector.broadcast %cst_58 : f32 to vector<8x288xf32>
    %57 = arith.maximumf %55, %56 : vector<8x288xf32>
    %c0_59 = arith.constant 0 : index
    %c0_60 = arith.constant 0 : index
    %c0_61 = arith.constant 0 : index
    %58 = vector.load %arg5[%c0_59, %c0_60, %c0_61] : memref<1x8x288xf32, #tpu.memory_space<vmem>>, vector<1x8x288xf32>
    %59 = vector.shape_cast %58 : vector<1x8x288xf32> to vector<8x288xf32>
    %60 = vector.shape_cast %57 : vector<8x288xf32> to vector<1x8x288xf32>
    tpu.vector_store %arg5[%c0_59, %c0_60, %c0_61], %60 {strides = array<i32>} : memref<1x8x288xf32, #tpu.memory_space<vmem>>, vector<1x8x288xf32>,
    return
  }
  func.func @transform_0(%arg0: i32, %arg1: i32) -> (i32, i32, i32, i32) {
    %c0_i32 = arith.constant 0 : i32
    %c0_i32_0 = arith.constant 0 : i32
    %c0_i32_1 = arith.constant 0 : i32
    return %arg0, %arg1, %c0_i32, %c0_i32_0 : i32, i32, i32, i32
  }
  func.func @transform_1(%arg0: i32, %arg1: i32) -> (i32, i32, i32) {
    %c0_i32 = arith.constant 0 : i32
    %c0_i32_0 = arith.constant 0 : i32
    %c0_i32_1 = arith.constant 0 : i32
    %c0_i32_2 = arith.constant 0 : i32
    return %c0_i32, %c0_i32_0, %c0_i32_1 : i32, i32, i32
  }
  func.func @transform_2(%arg0: i32, %arg1: i32) -> (i32, i32) {
    %c0_i32 = arith.constant 0 : i32
    %c0_i32_0 = arith.constant 0 : i32
    %c0_i32_1 = arith.constant 0 : i32
    return %c0_i32, %c0_i32_0 : i32, i32
  }
  func.func @transform_3(%arg0: i32, %arg1: i32) -> (i32, i32, i32) {
    %c0_i32 = arith.constant 0 : i32
    %c0_i32_0 = arith.constant 0 : i32
    return %arg0, %c0_i32, %arg1 : i32, i32, i32
  }
}

</mosaic_0001>

<bundles_post_ra>
// kernel: tpu_custom_call.1
= control target key start
LH: loop header
LB: loop body
LE: loop exit
PB: predicated region body
PF: predicated region fallthrough
CT: control target
= control target key end

     0   :  { %8 = vsyncpa [#allocation3], 0  ;;  %s2373_s0 = inlined_call_operand.vmem [shape: f32[2,1,4,384], index: 0, kind: input, shape index: {}]   ;;  %s2374_s1 = inlined_call_operand.vmem [shape: f32[9,8,4], index: 1, kind: input, shape index: {}]   ;;  %s2375_s2 = inlined_call_operand.vmem [shape: f32[8,1], index: 2, kind: input, shape index: {}]   ;;  %s2376_s3 = inlined_call_operand.hbm [shape: f32[2,8,288], index: 3, kind: output, shape index: {}]  }
   0x1   :  { %10 = vsyncpa [#allocation3 + $0x1], 0  ;;  %s2118_s12 = smov 0   ;;  %s2120_s13 = smov 0  }
   0x2   :  { %s2122_s14 = smov 0   ;;  %s2124_s15 = smov 0  }
   0x3   :  { %s2126_s16 = smov 0   ;;  %s2128_s17 = smov 0  }
   0x4 LB: > { %s1812_s18 = sadd.s32 4294967295, %s2084_s17   ;;  %s1813_s19 = sadd.s32 4294967294, %s2084_s17   ;;  %s2084_s17 = sphi %s2128_s17, %s16_s17   ;;  %s2080_s16 = sphi %s2126_s16, %s2383_s16   ;;  %s2076_s15 = sphi %s2124_s15, %s2382_s15   ;;  %s2072_s14 = sphi %s2122_s14, %s2381_s14   ;;  %s2068_s13 = sphi %s2120_s13, %s2380_s13   ;;  %s2064_s12 = sphi %s2118_s12, %s2379_s12  }
   0x5   : > { %s28_s20 = sadd.s32 1, %s2080_s16  ;;  %s107_s21 = sadd.s32 1, %s2072_s14 }
   0x6   : > { %p30_p0 = scmp.ge.s32.totalorder %s28_s20, 2  ;;  %p117_p1 = scmp.ne.s32.totalorder %s2072_s14, %s2068_s13 }
   0x7   : > { %p118_p2 = scmp.eq.s32.totalorder %s1812_s18, 1  ;;  %p123_p3 = scmp.ne.s32.totalorder %s2068_s13, %s2064_s12 }
   0x8   : > { %s2385_s20 = smov (%p30_p0, %s28_s20), 0  ;;  %p124_p5 = scmp.eq.s32.totalorder %s1813_s19, 1 }
   0x9   : > { %p2158_p4 = por %p118_p2, %p117_p1  ;;  %s102_s23 = ssub.s32 %s2080_s16, %s2385_s20 }
   0xa   : > { %p1816_p6 = scmp.ge.s32.totalorder %s2084_s17, 1  ;;  %p105_p7 = scmp.eq.s32.totalorder %s102_s23, 0 }
   0xb   : > { %p2165_p8 = por %p124_p5, %p123_p3  ;;  %p160_p9 = scmp.lt.s32.totalorder %s2084_s17, 3 }
   0xc   : > { %s2171_s25 = scalar_select %p105_p7, %s2072_s14, %s107_s21  }
   0xd   : > { %p161_p10 = pnand %p1816_p6, %p160_p9 }
   0xe   : > { %p188_p11 = scmp.lt.s32.totalorder (!%p161_p10), %s2076_s15, 1  ;;  %s2088_s4 = smov (!%p161_p10), 127  }
   0xf   : > { %164 = sbr.rel (%p161_p10) target bundleno = 402 (0x192), region = 32  ;;  %s2089_s5 = smov (!%p161_p10), 126  }
  0x10   : > { %s2090_s6 = smov (!%p161_p10), 110   ;;  %s2091_s7 = smov (!%p161_p10), 109  }
  0x11   : > { %s2092_s8 = smov (!%p161_p10), 108   ;;  %s2093_s9 = smov (!%p161_p10), 92  }
  0x12   : > { %s2095_s10 = smov (!%p161_p10), 91   ;;  %s2096_s11 = smov (!%p161_p10), 90  }
  0x13   : > { %s185_s23 = sand.u32 (!%p161_p10), 1, %s2068_s13  }
  0x14   : > { %v2086_v0 = vmov 0.0   ;;  %vm2087_vm0 = vmmov 0   ;;  %s189_s26 = scalar_select %p188_p11, %s2076_s15, 1  ;;  %v2094_v10 = vmov 0   ;;  %v1700_v12 = vld [vmem:[%s2375_s2] sm:$0xff]  ;;  %vm219_vm1 = vcmask 1043456  }
  0x15   : > { %1892 = vmatprep.subr.mxu1 %v2086_v0  ;;  %1894 = vmatprep.mubr.msk.f32.mxu1 %vm2087_vm0, %v2086_v0  ;;  %v1818_v13 = vld [vmem:[%s2374_s1 + $0x8] sm:$0xff]  ;;  %vm215_vm2 = vcmask 31744   ;;  %v200_v16 = vld [vmem:[%s2374_s1] sm:$0xff]  ;;  %vm212_vm3 = vcmask 1039360   ;;  %v1829_v19 = vld [vmem:[%s2374_s1 + $0x10] sm:$0xff]  ;;  %vm530_vm4 = vcmask 1031168  }
  0x16   : > { %290 = vmatprep.mubr.f32.mxu0 %v2086_v0  ;;  %s1938_s27 = smul.u32 12, %s189_s26  ;;  %2006 = vset.pattern.permute.xlu0 %v2094_v10  ;;  %v1835_v26 = vld [vmem:[%s2374_s1 + $0x18] sm:$0xff]  ;;  %vm699_vm5 = vcmask 900096   ;;  %vm868_vm6 = vcmask 891904   ;;  %v1841_v35 = vld [vmem:[%s2374_s1 + $0x20] sm:$0xff]  ;;  %vm1037_vm7 = vcmask 883712  }
  0x17   : > { %v1847_v40 = vld [vmem:[%s2374_s1 + $0x28] sm:$0xff]  ;;  %vm1206_vm8 = vcmask 752640   ;;  %v1853_v45 = vld [vmem:[%s2374_s1 + $0x30] sm:$0xff]  ;;  %vm1375_vm9 = vcmask 744448   ;;  %v1859_v50 = vld [vmem:[%s2374_s1 + $0x38] sm:$0xff]  ;;  %vm1544_vm10 = vcmask 736256  }
  0x18   : > { %s2182_s30 = scalar_lea.vmem %s2373_s0, %s1938_s27  ;;  %v1865_v57 = vld [vmem:[%s2374_s1 + $0x40] sm:$0xff]  ;;  %s1937_s26 = smul.u32 24, %s185_s23  ;;  %vm1714_vm11 = vcmask 261120  }
  0x19   : > { %v199_v1 = vld [vmem:[%s2182_s30 + $0x8] sm:$0xf]  ;;  %v2186_v2 = vld [vmem:[%s2182_s30] sm:$0xff]  ;;  %s1939_s27 = smul.u32 384, %s2076_s15  ;;  %s2097_s15 = smov [#allocation2]  }
  0x1a   : > { %210 = vrot.lane.b32.xlu0 %v199_v1, %s2088_s4  ;;  %206 = vrot.lane.b32.xlu1 %v2186_v2, %s2088_s4  ;;  %v518_v3 = vld [vmem:[%s2182_s30 + $0x8] sm:$0xf]  ;;  %v2192_v4 = vcombine.high %v2186_v2, %v2186_v2  ;;  %s187_s28 = scalar_lea.vmem [#allocation2], %s1937_s26 }
  0x1b   : > { %v687_v5 = vld [vmem:[%s2182_s30 + $0x8] sm:$0xf]  ;;  %s1733_s29 = sshll.u32 %s187_s28, 4  ;;  %s1734_s29 = int_to_ptr.vmem [resolvable:$true] %s1733_s29 }
  0x1c   : > { %v856_v6 = vld [vmem:[%s2182_s30 + $0x8] sm:$0xf] }
  0x1d   : > { %v1025_v7 = vld [vmem:[%s2182_s30 + $0x8] sm:$0xf] }
  0x1e   : > { %528 = vrot.lane.b32.xlu0 %v518_v3, %s2089_s5  ;;  %524 = vrot.lane.b32.xlu1 %v2186_v2, %s2089_s5  ;;  %v1194_v8 = vld [vmem:[%s2182_s30 + $0x8] sm:$0xf] }
  0x1f   : > { %v1363_v9 = vld [vmem:[%s2182_s30 + $0x8] sm:$0xf] }
  0x20   : > { %v1532_v11 = vld [vmem:[%s2182_s30 + $0x8] sm:$0xf] }
  0x22   : > { %526 = vrot.lane.b32.xlu1 %v2192_v4, %s2089_s5  ;;  %208 = vrot.lane.b32.xlu0 %v2192_v4, %s2088_s4  ;;  %s1731_s5 = scalar_lea.hbm %s2376_s3, %s1939_s27 }
  0x26   : > { %697 = vrot.lane.b32.xlu1 %v687_v5, %s2090_s6  ;;  %695 = vrot.lane.b32.xlu0 %v2192_v4, %s2090_s6 }
  0x2a   : > { %864 = vrot.lane.b32.xlu1 %v2192_v4, %s2091_s7  ;;  %693 = vrot.lane.b32.xlu0 %v2186_v2, %s2090_s6  ;;  %s1717_s6 = scalar_lea.sflag [#allocation3], %s185_s23 }
  0x2e   : > { %862 = vrot.lane.b32.xlu1 %v2186_v2, %s2091_s7  ;;  %866 = vrot.lane.b32.xlu0 %v856_v6, %s2091_s7  ;;  %s2008_s7 = scalar_lea.vmem %s1734_s29, 384 }
  0x2f   : > { %p2009_p12 = scmp.ne.s32.totalorder %s1734_s29, %s2008_s7 }
  0x31   : > { %p2010_p13 = pnand %p2009_p12, %p2158_p4 }
  0x32   : > { %1035 = vrot.lane.b32.xlu1 %v1025_v7, %s2092_s8  ;;  %1033 = vrot.lane.b32.xlu0 %v2192_v4, %s2092_s8 }
  0x33   : > { %p2011_p0 = pneg %p2010_p13 }
  0x36   : > { %1202 = vrot.lane.b32.xlu1 %v2192_v4, %s2093_s9  ;;  %1031 = vrot.lane.b32.xlu0 %v2186_v2, %s2092_s8  ;;  %s2012_s8 = sshll.u32 %s2097_s15, 4  ;;  %s2013_s8 = int_to_ptr.vmem [resolvable:$false] %s2012_s8 }
  0x37   : > { %p2015_p1 = scmp.lt.s32.totalorder %s1734_s29, %s2013_s8 }
  0x3a   : > { %1200 = vrot.lane.b32.xlu1 %v2186_v2, %s2093_s9  ;;  %1204 = vrot.lane.b32.xlu0 %v1194_v8, %s2093_s9  ;;  %s2014_s9 = scalar_lea.vmem %s2013_s8, 768 }
  0x3b   : > { %p2016_p2 = scmp.lt.s32.totalorder %s2014_s9, %s2008_s7 }
  0x3d   : > { %p2017_p3 = por %p2016_p2, %p2015_p1 }
  0x3e   : > { %1373 = vrot.lane.b32.xlu1 %v1363_v9, %s2095_s10  ;;  %1371 = vrot.lane.b32.xlu0 %v2192_v4, %s2095_s10 }
  0x3f   : > { %p2018_p5 = pnand %p2017_p3, %p2011_p0 }
  0x42   : > { %1540 = vrot.lane.b32.xlu1 %v2192_v4, %s2096_s11  ;;  %1369 = vrot.lane.b32.xlu0 %v2186_v2, %s2095_s10 }
  0x46   : > { %1538 = vrot.lane.b32.xlu1 %v2186_v2, %s2096_s11  ;;  %1542 = vrot.lane.b32.xlu0 %v1532_v11, %s2096_s11 }
  0x4a   : > { %1703 = vperm.xlu0 %2006, %v1700_v12  }
  0x8c   : > { %v211_v14 = vpop.permute.xlu0 %210  ;;  %v207_v15 = vpop.permute.xlu1 %206 }
  0x8d   : > { %1893 = vmatpush3.msk.msra.mxu1 %vm219_vm1, %v211_v14 }
  0x8e   : > { %1895 = vmatmul.mubr.msk.f32.vlgmr.msra.gmra.mxu1 %vm215_vm2, %v1818_v13  ;;  %1897 = vmatprep.subr.mxu1 %v2086_v0 }
  0x8f   : > { %1898 = vmatpush3.msk.msra.mxu1 %vm219_vm1, %v199_v1  ;;  %1899 = vmatprep.mubr.msk.f32.mxu1 %vm2087_vm0, %v2086_v0 }
  0x90   : > { %v529_v17 = vpop.permute.xlu0 %528  ;;  %v525_v18 = vpop.permute.xlu1 %524  ;;  %1902 = vmatprep.subr.mxu1 %v2086_v0 }
  0x92   : > { %1900 = vmatmul.mubr.msk.f32.vlgmr.msra.gmra.mxu1 %vm215_vm2, %v200_v16 }
  0x93   : > { %1903 = vmatpush3.msk.msra.mxu1 %vm219_vm1, %v529_v17  ;;  %1904 = vmatprep.mubr.msk.f32.mxu1 %vm2087_vm0, %v2086_v0 }
  0x94   : > { %v527_v20 = vpop.permute.xlu1 %526  ;;  %v209_v21 = vpop.permute.xlu0 %208  ;;  %1907 = vmatprep.subr.mxu1 %v2086_v0 }
  0x95   : > { %v214_v22 = vsel %vm212_vm3, %v209_v21, %v211_v14  ;;  %v213_v23 = vsel %vm212_vm3, %v207_v15, %v209_v21  ;;  %v532_v27 = vsel %vm530_vm4, %v527_v20, %v529_v17  ;;  %v531_v28 = vsel %vm530_vm4, %v525_v18, %v527_v20 }
  0x96   : > { %1819 = vmatprep.subr.msk.mxu0 %vm219_vm1, %v214_v22  ;;  %1905 = vmatmul.mubr.msk.f32.vlgmr.msra.gmra.mxu1 %vm215_vm2, %v1829_v19 }
  0x97   : > { %1820 = vmatpush1.msk.msra.mxu0 %vm219_vm1, %v213_v23  ;;  %1909 = vmatprep.mubr.msk.f32.mxu1 %vm2087_vm0, %v2086_v0 }
  0x98   : > { %v698_v24 = vpop.permute.xlu1 %697  ;;  %1821 = vmatmul.mubr.msk.f32.vlgmr.msra.gmra.mxu0 %vm215_vm2, %v1818_v13  ;;  %1824 = vmatprep.subr.msk.mxu0 %vm219_vm1, %v2192_v4  ;;  %v696_v25 = vpop.permute.xlu0 %695 }
  0x99   : > { %1825 = vmatpush1.msk.msra.mxu0 %vm219_vm1, %v2186_v2  ;;  %1908 = vmatpush3.msk.msra.mxu1 %vm219_vm1, %v698_v24  ;;  %v701_v31 = vsel %vm699_vm5, %v696_v25, %v698_v24 }
  0x9a   : > { %1830 = vmatprep.subr.msk.mxu0 %vm219_vm1, %v532_v27  ;;  %440 = vmatprep.mubr.f32.mxu0 %v2086_v0 }
  0x9b   : > { %1912 = vmatprep.subr.mxu1 %v2086_v0  ;;  %1910 = vmatmul.mubr.msk.f32.vlgmr.msra.gmra.mxu1 %vm215_vm2, %v1835_v26 }
  0x9c   : > { %v865_v29 = vpop.permute.xlu1 %864  ;;  %1826 = vmatmul.mubr.msk.f32.vlgmr.msra.gmra.mxu0 %vm215_vm2, %v200_v16  ;;  %v694_v30 = vpop.permute.xlu0 %693  ;;  %1914 = vmatprep.mubr.msk.f32.mxu1 %vm2087_vm0, %v2086_v0 }
  0x9d   : > { %1831 = vmatpush1.msk.msra.mxu0 %vm219_vm1, %v531_v28  ;;  %606 = vmatprep.mubr.f32.mxu0 %v2086_v0  ;;  %v700_v32 = vsel %vm699_vm5, %v694_v30, %v696_v25 }
  0x9e   : > { %1836 = vmatprep.subr.msk.mxu0 %vm219_vm1, %v701_v31 }
  0xa0   : > { %v863_v33 = vpop.permute.xlu1 %862  ;;  %1832 = vmatmul.mubr.msk.f32.vlgmr.msra.gmra.mxu0 %vm215_vm2, %v1829_v19  ;;  %v867_v34 = vpop.permute.xlu0 %866 }
  0xa1   : > { %1837 = vmatpush1.msk.msra.mxu0 %vm219_vm1, %v700_v32  ;;  %v870_v36 = vsel %vm868_vm6, %v865_v29, %v867_v34  ;;  %1913 = vmatpush3.msk.msra.mxu1 %vm219_vm1, %v867_v34  ;;  %v869_v37 = vsel %vm868_vm6, %v863_v33, %v865_v29 }
  0xa2   : > { %1842 = vmatprep.subr.msk.mxu0 %vm219_vm1, %v870_v36  ;;  %775 = vmatprep.mubr.f32.mxu0 %v2086_v0 }
  0xa3   : > { %1915 = vmatmul.mubr.msk.f32.vlgmr.msra.gmra.mxu1 %vm215_vm2, %v1841_v35  ;;  %1917 = vmatprep.subr.mxu1 %v2086_v0 }
  0xa4   : > { %v1036_v38 = vpop.permute.xlu1 %1035  ;;  %1838 = vmatmul.mubr.msk.f32.vlgmr.msra.gmra.mxu0 %vm215_vm2, %v1835_v26  ;;  %v1034_v39 = vpop.permute.xlu0 %1033  ;;  %1919 = vmatprep.mubr.msk.f32.mxu1 %vm2087_vm0, %v2086_v0 }
  0xa5   : > { %1843 = vmatpush1.msk.msra.mxu0 %vm219_vm1, %v869_v37  ;;  %v1039_v41 = vsel %vm1037_vm7, %v1034_v39, %v1036_v38  ;;  %1918 = vmatpush3.msk.msra.mxu1 %vm219_vm1, %v1036_v38 }
  0xa6   : > { %1848 = vmatprep.subr.msk.mxu0 %vm219_vm1, %v1039_v41  ;;  %944 = vmatprep.mubr.f32.mxu0 %v2086_v0 }
  0xa7   : > { %1920 = vmatmul.mubr.msk.f32.vlgmr.msra.gmra.mxu1 %vm215_vm2, %v1847_v40  ;;  %1922 = vmatprep.subr.mxu1 %v2086_v0 }
  0xa8   : > { %v1203_v42 = vpop.permute.xlu1 %1202  ;;  %1844 = vmatmul.mubr.msk.f32.vlgmr.msra.gmra.mxu0 %vm215_vm2, %v1841_v35  ;;  %v1032_v43 = vpop.permute.xlu0 %1031  ;;  %1924 = vmatprep.mubr.msk.f32.mxu1 %vm2087_vm0, %v2086_v0 }
  0xa9   : > { %v1038_v44 = vsel %vm1037_vm7, %v1032_v43, %v1034_v39  ;;  %1113 = vmatprep.mubr.f32.mxu0 %v2086_v0 }
  0xaa   : > { %1849 = vmatpush1.msk.msra.mxu0 %vm219_vm1, %v1038_v44 }
  0xac   : > { %v1201_v46 = vpop.permute.xlu1 %1200  ;;  %1850 = vmatmul.mubr.msk.f32.vlgmr.msra.gmra.mxu0 %vm215_vm2, %v1847_v40  ;;  %v1205_v47 = vpop.permute.xlu0 %1204 }
  0xad   : > { %v1207_v48 = vsel %vm1206_vm8, %v1201_v46, %v1203_v42  ;;  %v1208_v49 = vsel %vm1206_vm8, %v1203_v42, %v1205_v47  ;;  %1923 = vmatpush3.msk.msra.mxu1 %vm219_vm1, %v1205_v47  ;;  %1282 = vmatprep.mubr.f32.mxu0 %v2086_v0 }
  0xae   : > { %1854 = vmatprep.subr.msk.mxu0 %vm219_vm1, %v1208_v49  ;;  %1925 = vmatmul.mubr.msk.f32.vlgmr.msra.gmra.mxu1 %vm215_vm2, %v1853_v45 }
  0xaf   : > { %1855 = vmatpush1.msk.msra.mxu0 %vm219_vm1, %v1207_v48  ;;  %1927 = vmatprep.subr.mxu1 %v2086_v0 }
  0xb0   : > { %v1374_v51 = vpop.permute.xlu1 %1373  ;;  %1856 = vmatmul.mubr.msk.f32.vlgmr.msra.gmra.mxu0 %vm215_vm2, %v1853_v45  ;;  %v1372_v52 = vpop.permute.xlu0 %1371  ;;  %1929 = vmatprep.mubr.msk.f32.mxu1 %vm2087_vm0, %v2086_v0 }
  0xb1   : > { %v1377_v53 = vsel %vm1375_vm9, %v1372_v52, %v1374_v51  ;;  %1928 = vmatpush3.msk.msra.mxu1 %vm219_vm1, %v1374_v51  ;;  %1451 = vmatprep.mubr.f32.mxu0 %v2086_v0 }
  0xb2   : > { %1860 = vmatprep.subr.msk.mxu0 %vm219_vm1, %v1377_v53  ;;  %1930 = vmatmul.mubr.msk.f32.vlgmr.msra.gmra.mxu1 %vm215_vm2, %v1859_v50 }
  0xb3   : > { %1932 = vmatprep.subr.mxu1 %v2086_v0  ;;  %1934 = vmatprep.mubr.msk.f32.mxu1 %vm2087_vm0, %v2086_v0 }
  0xb4   : > { %v1541_v54 = vpop.permute.xlu1 %1540  ;;  %v1370_v55 = vpop.permute.xlu0 %1369 }
  0xb5   : > { %v1376_v56 = vsel %vm1375_vm9, %v1370_v55, %v1372_v52 }
  0xb6   : > { %1861 = vmatpush1.msk.msra.mxu0 %vm219_vm1, %v1376_v56 }
  0xb7   : > { %1862 = vmatmul.mubr.msk.f32.vlgmr.msra.gmra.mxu0 %vm215_vm2, %v1859_v50 }
  0xb8   : > { %v1539_v58 = vpop.permute.xlu1 %1538  ;;  %v1543_v59 = vpop.permute.xlu0 %1542  ;;  %1620 = vmatprep.mubr.f32.mxu0 %v2086_v0 }
  0xb9   : > { %v1545_v60 = vsel %vm1544_vm10, %v1539_v58, %v1541_v54  ;;  %v1546_v61 = vsel %vm1544_vm10, %v1541_v54, %v1543_v59  ;;  %1933 = vmatpush3.msk.msra.mxu1 %vm219_vm1, %v1543_v59 }
  0xba   : > { %1866 = vmatprep.subr.msk.mxu0 %vm219_vm1, %v1546_v61  ;;  %1935 = vmatmul.mubr.msk.f32.vlgmr.msra.gmra.mxu1 %vm215_vm2, %v1865_v57 }
  0xbb   : > { %1867 = vmatpush1.msk.msra.mxu0 %vm219_vm1, %v1545_v60 }
  0xbc   : > { %1868 = vmatmul.mubr.msk.f32.vlgmr.msra.gmra.mxu0 %vm215_vm2, %v1865_v57 }
  0xc5   : > { %v1704_v49 = vpop.permute.xlu0 %1703 }
 0x14e   : > { %v363_v62 = vpop.f32.mrf.mxu1 }
 0x150   : > { %v1896_v63 = vpop.f32.mrf.mxu1 }
 0x152   : > { %v513_v1 = vpop.f32.mrf.mxu1 }
 0x153   : > { %v514_v14 = vadd.f32 %v513_v1, %v363_v62 }
 0x154   : > { %v1901_v2 = vpop.f32.mrf.mxu1 }
 0x156   : > { %v679_v3 = vpop.f32.mrf.mxu1 }
 0x157   : > { %v685_v19 = vadd.f32 %v679_v3, %v514_v14 }
 0x158   : > { %v292_v4 = vpop.f32.mrf.mxu0  ;;  %v1906_v5 = vpop.f32.mrf.mxu1 }
 0x15a   : > { %v294_v0 = vpop.f32.mrf.mxu0 }
 0x15b   : > { %v848_v6 = vpop.f32.mrf.mxu1 }
 0x15c   : > { %v442_v7 = vpop.f32.mrf.mxu0  ;;  %v854_v23 = vadd.f32 %v848_v6, %v685_v19 }
 0x15d   : > { %v1911_v8 = vpop.f32.mrf.mxu1  ;;  %v443_v26 = vadd.f32 %v442_v7, %v292_v4 }
 0x15e   : > { %v444_v9 = vpop.f32.mrf.mxu0 }
 0x15f   : > { %v445_v28 = vadd.f32 %v444_v9, %v294_v0 }
 0x160   : > { %v608_v10 = vpop.f32.mrf.mxu0 }
 0x161   : > { %v683_v29 = vadd.f32 %v608_v10, %v443_v26 }
 0x162   : > { %v610_v11 = vpop.f32.mrf.mxu0 }
 0x163   : > { %v1017_v12 = vpop.f32.mrf.mxu1  ;;  %v684_v33 = vadd.f32 %v610_v11, %v445_v28 }
 0x164   : > { %v777_v13 = vpop.f32.mrf.mxu0  ;;  %v1023_v30 = vadd.f32 %v1017_v12, %v854_v23 }
 0x165   : > { %v1916_v15 = vpop.f32.mrf.mxu1  ;;  %v852_v34 = vadd.f32 %v777_v13, %v683_v29 }
 0x166   : > { %v779_v16 = vpop.f32.mrf.mxu0 }
 0x167   : > { %v1186_v17 = vpop.f32.mrf.mxu1  ;;  %v853_v36 = vadd.f32 %v779_v16, %v684_v33 }
 0x168   : > { %v946_v18 = vpop.f32.mrf.mxu0  ;;  %v1192_v38 = vadd.f32 %v1186_v17, %v1023_v30 }
 0x169   : > { %v1921_v20 = vpop.f32.mrf.mxu1  ;;  %v1021_v37 = vadd.f32 %v946_v18, %v852_v34 }
 0x16a   : > { %v948_v21 = vpop.f32.mrf.mxu0 }
 0x16b   : > { %v1022_v40 = vadd.f32 %v948_v21, %v853_v36 }
 0x16c   : > { %v1115_v22 = vpop.f32.mrf.mxu0 }
 0x16d   : > { %v1190_v41 = vadd.f32 %v1115_v22, %v1021_v37 }
 0x16e   : > { %v1117_v24 = vpop.f32.mrf.mxu0  ;;  %v1355_v25 = vpop.f32.mrf.mxu1 }
 0x16f   : > { %v1361_v42 = vadd.f32 %v1355_v25, %v1192_v38  ;;  %v1191_v44 = vadd.f32 %v1117_v24, %v1022_v40 }
 0x170   : > { %v1926_v27 = vpop.f32.mrf.mxu1  ;;  %v1284_v31 = vpop.f32.mrf.mxu0 }
 0x171   : > { %v1359_v45 = vadd.f32 %v1284_v31, %v1190_v41 }
 0x172   : > { %v1524_v32 = vpop.f32.mrf.mxu1  ;;  %v1286_v39 = vpop.f32.mrf.mxu0 }
 0x173   : > { %v1530_v46 = vadd.f32 %v1524_v32, %v1361_v42  ;;  %v1360_v50 = vadd.f32 %v1286_v39, %v1191_v44 }
 0x174   : > { %v1931_v35 = vpop.f32.mrf.mxu1 }
 0x177   : > { %v1453_v43 = vpop.f32.mrf.mxu0 }
 0x178   : > { %v1528_v51 = vadd.f32 %v1453_v43, %v1359_v45 }
 0x179   : > { %v1455_v47 = vpop.f32.mrf.mxu0 }
 0x17a   : > { %v1693_v48 = vpop.f32.mrf.mxu1  ;;  %v1529_v55 = vadd.f32 %v1455_v47, %v1360_v50 }
 0x17b   : > { %v1699_v52 = vadd.f32 %v1693_v48, %v1530_v46 }
 0x17c   : > { %v1622_v53 = vpop.f32.mrf.mxu0  ;;  %v1936_v54 = vpop.f32.mrf.mxu1 }
 0x17d   : > { %v1697_v56 = vadd.f32 %v1622_v53, %v1528_v51  ;;  %v1708_v57 = vadd.f32 %v1704_v49, %v1699_v52 }
 0x17e   : > { %v1624_v58 = vpop.f32.mrf.mxu0 }
 0x17f   : > { %v1706_v59 = vadd.f32 %v1704_v49, %v1697_v56  ;;  %v1711_v60 = vmax.f32 %v1708_v57, 0.0  ;;  %v1698_v61 = vadd.f32 %v1624_v58, %v1529_v55 }
 0x181   : > { %v1709_v62 = vmax.f32 %v1706_v59, 0.0  ;;  %1715 = vst.msk [vmem:[%s187_s28 + $0x10] sm:$0xff] %vm1714_vm11, %v1711_v60  ;;  %v1707_v63 = vadd.f32 %v1704_v49, %v1698_v61 }
 0x183   : > { %1712 = vst [vmem:[%s187_s28] sm:$0xff] %v1709_v62  ;;  %v1710_v1 = vmax.f32 %v1707_v63, 0.0 }
 0x185   : > { %1713 = vst [vmem:[%s187_s28 + $0x8] sm:$0xff] %v1710_v1 }
 0x186   : > { %2021 = shalt.err (!%p2018_p5)
}
 0x187   : > { %s2022_s10 = scalar_lea.hbm %s1731_s5, 384  ;;  %s2026_s19 = scalar_lea.hbm %s2376_s3, 768 }
 0x188   : > { %p2023_p6 = scmp.ne.s32.totalorder %s1731_s5, %s2022_s10  ;;  %p2027_p10 = scmp.lt.s32.totalorder %s1731_s5, %s2376_s3 }
 0x189   : > { %p2028_p11 = scmp.lt.s32.totalorder %s2026_s19, %s2022_s10 }
 0x18a   : > { %p2024_p7 = pnand %p2023_p6, %p2158_p4 }
 0x18b   : > { %p2029_p12 = por %p2028_p11, %p2027_p10 }
 0x18c   : > { %p2025_p9 = pneg %p2024_p7 }
 0x18e   : > { %p2030_p13 = pnand %p2029_p12, %p2025_p9 }
 0x190   : > { %2033 = shalt.err (!%p2030_p13)
}
 0x191   : > { %1940 = dma.vmem_to_hbm [thread:$0]  (%p2158_p4), %s1734_s29, 384, %s1731_s5, %s1717_s6  }
 0x192 PF: > { %p1946_p0 = scmp.ge.s32.totalorder %s2084_s17, 2  ;;  %s1745_s26 = sand.u32 1, %s2064_s12  }
 0x193   : > { %s1746_s27 = scalar_lea.sflag [#allocation3], %s1745_s26 }
 0x194   : > { %p1943_p1 = pnand %p1946_p0, %p2165_p8 }
 0x196   : > { %p1944_p2 = pneg %p1943_p1 }
 0x198   : > { %2059 = dma.done.wait (%p1944_p2), %s1746_s27, 384  }
 0x199   : > { %2061 = vsyncadd (%p1944_p2), %s1746_s27, 4294966912  ;;  %s16_s17 = sadd.s32 1, %s2084_s17   ;;  %s2379_s12 = smov %s2068_s13 }
 0x19a   : > { %p13_p3 = scmp.ge.s32.totalorder %s16_s17, 4   ;;  %s2380_s13 = smov %s2072_s14 }
 0x19b   : > { %s2381_s14 = smov %s2171_s25  ;;  %s2382_s15 = smov %s2080_s16 }
 0x19c   : > { %s2383_s16 = smov %s2385_s20  ;;  %15 = sbr.rel (!%p13_p3) target bundleno = 4 (0x4), region = 75 }
 0x1a1   :  { %1751 = vsyncpa [#allocation3], 1 }
 0x1a2   :  { %1753 = vsyncpa [#allocation3 + $0x1], 1 }

// kernel: tpu_custom_call.1
= control target key start
LH: loop header
LB: loop body
LE: loop exit
PB: predicated region body
PF: predicated region fallthrough
CT: control target
= control target key end

     0   :  { %8 = vsyncpa [#allocation3], 0  ;;  %s2373_s0 = inlined_call_operand.vmem [shape: f32[2,1,4,384], index: 0, kind: input, shape index: {}]   ;;  %s2374_s1 = inlined_call_operand.vmem [shape: f32[9,8,4], index: 1, kind: input, shape index: {}]   ;;  %s2375_s2 = inlined_call_operand.vmem [shape: f32[8,1], index: 2, kind: input, shape index: {}]   ;;  %s2376_s3 = inlined_call_operand.hbm [shape: f32[2,8,288], index: 3, kind: output, shape index: {}]  }
   0x1   :  { %10 = vsyncpa [#allocation3 + $0x1], 0  ;;  %s2118_s12 = smov 0   ;;  %s2120_s13 = smov 0  }
   0x2   :  { %s2122_s14 = smov 0   ;;  %s2124_s15 = smov 0  }
   0x3   :  { %s2126_s16 = smov 0   ;;  %s2128_s17 = smov 0  }
   0x4 LB: > { %s1812_s18 = sadd.s32 4294967295, %s2084_s17   ;;  %s1813_s19 = sadd.s32 4294967294, %s2084_s17   ;;  %s2084_s17 = sphi %s2128_s17, %s16_s17   ;;  %s2080_s16 = sphi %s2126_s16, %s2383_s16   ;;  %s2076_s15 = sphi %s2124_s15, %s2382_s15   ;;  %s2072_s14 = sphi %s2122_s14, %s2381_s14   ;;  %s2068_s13 = sphi %s2120_s13, %s2380_s13   ;;  %s2064_s12 = sphi %s2118_s12, %s2379_s12  }
   0x5   : > { %s28_s20 = sadd.s32 1, %s2080_s16  ;;  %s107_s21 = sadd.s32 1, %s2072_s14 }
   0x6   : > { %p30_p0 = scmp.ge.s32.totalorder %s28_s20, 2  ;;  %p117_p1 = scmp.ne.s32.totalorder %s2072_s14, %s2068_s13 }
   0x7   : > { %p118_p2 = scmp.eq.s32.totalorder %s1812_s18, 1  ;;  %p123_p3 = scmp.ne.s32.totalorder %s2068_s13, %s2064_s12 }
   0x8   : > { %s2385_s20 = smov (%p30_p0, %s28_s20), 0  ;;  %p124_p5 = scmp.eq.s32.totalorder %s1813_s19, 1 }
   0x9   : > { %p2158_p4 = por %p118_p2, %p117_p1  ;;  %s102_s23 = ssub.s32 %s2080_s16, %s2385_s20 }
   0xa   : > { %p1816_p6 = scmp.ge.s32.totalorder %s2084_s17, 1  ;;  %p105_p7 = scmp.eq.s32.totalorder %s102_s23, 0 }
   0xb   : > { %p2165_p8 = por %p124_p5, %p123_p3  ;;  %p160_p9 = scmp.lt.s32.totalorder %s2084_s17, 3 }
   0xc   : > { %s2171_s25 = scalar_select %p105_p7, %s2072_s14, %s107_s21  }
   0xd   : > { %p161_p10 = pnand %p1816_p6, %p160_p9 }
   0xe   : > { %p188_p11 = scmp.lt.s32.totalorder (!%p161_p10), %s2076_s15, 1  ;;  %s2088_s4 = smov (!%p161_p10), 127  }
   0xf   : > { %164 = sbr.rel (%p161_p10) target bundleno = 402 (0x192), region = 32  ;;  %s2089_s5 = smov (!%p161_p10), 126  }
  0x10   : > { %s2090_s6 = smov (!%p161_p10), 110   ;;  %s2091_s7 = smov (!%p161_p10), 109  }
  0x11   : > { %s2092_s8 = smov (!%p161_p10), 108   ;;  %s2093_s9 = smov (!%p161_p10), 92  }
  0x12   : > { %s2095_s10 = smov (!%p161_p10), 91   ;;  %s2096_s11 = smov (!%p161_p10), 90  }
  0x13   : > { %s185_s23 = sand.u32 (!%p161_p10), 1, %s2068_s13  }
  0x14   : > { %v2086_v0 = vmov 0.0   ;;  %vm2087_vm0 = vmmov 0   ;;  %s189_s26 = scalar_select %p188_p11, %s2076_s15, 1  ;;  %v2094_v10 = vmov 0   ;;  %v1700_v12 = vld [vmem:[%s2375_s2] sm:$0xff]  ;;  %vm219_vm1 = vcmask 1043456  }
  0x15   : > { %1892 = vmatprep.subr.mxu1 %v2086_v0  ;;  %1894 = vmatprep.mubr.msk.f32.mxu1 %vm2087_vm0, %v2086_v0  ;;  %v1818_v13 = vld [vmem:[%s2374_s1 + $0x8] sm:$0xff]  ;;  %vm215_vm2 = vcmask 31744   ;;  %v200_v16 = vld [vmem:[%s2374_s1] sm:$0xff]  ;;  %vm212_vm3 = vcmask 1039360   ;;  %v1829_v19 = vld [vmem:[%s2374_s1 + $0x10] sm:$0xff]  ;;  %vm530_vm4 = vcmask 1031168  }
  0x16   : > { %290 = vmatprep.mubr.f32.mxu0 %v2086_v0  ;;  %s1938_s27 = smul.u32 12, %s189_s26  ;;  %2006 = vset.pattern.permute.xlu0 %v2094_v10  ;;  %v1835_v26 = vld [vmem:[%s2374_s1 + $0x18] sm:$0xff]  ;;  %vm699_vm5 = vcmask 900096   ;;  %vm868_vm6 = vcmask 891904   ;;  %v1841_v35 = vld [vmem:[%s2374_s1 + $0x20] sm:$0xff]  ;;  %vm1037_vm7 = vcmask 883712  }
  0x17   : > { %v1847_v40 = vld [vmem:[%s2374_s1 + $0x28] sm:$0xff]  ;;  %vm1206_vm8 = vcmask 752640   ;;  %v1853_v45 = vld [vmem:[%s2374_s1 + $0x30] sm:$0xff]  ;;  %vm1375_vm9 = vcmask 744448   ;;  %v1859_v50 = vld [vmem:[%s2374_s1 + $0x38] sm:$0xff]  ;;  %vm1544_vm10 = vcmask 736256  }
  0x18   : > { %s2182_s30 = scalar_lea.vmem %s2373_s0, %s1938_s27  ;;  %v1865_v57 = vld [vmem:[%s2374_s1 + $0x40] sm:$0xff]  ;;  %s1937_s26 = smul.u32 24, %s185_s23  ;;  %vm1714_vm11 = vcmask 261120  }
  0x19   : > { %v199_v1 = vld [vmem:[%s2182_s30 + $0x8] sm:$0xf]  ;;  %v2186_v2 = vld [vmem:[%s2182_s30] sm:$0xff]  ;;  %s1939_s27 = smul.u32 384, %s2076_s15  ;;  %s2097_s15 = smov [#allocation2]  }
  0x1a   : > { %210 = vrot.lane.b32.xlu0 %v199_v1, %s2088_s4  ;;  %206 = vrot.lane.b32.xlu1 %v2186_v2, %s2088_s4  ;;  %v518_v3 = vld [vmem:[%s2182_s30 + $0x8] sm:$0xf]  ;;  %v2192_v4 = vcombine.high %v2186_v2, %v2186_v2  ;;  %s187_s28 = scalar_lea.vmem [#allocation2], %s1937_s26 }
  0x1b   : > { %v687_v5 = vld [vmem:[%s2182_s30 + $0x8] sm:$0xf]  ;;  %s1733_s29 = sshll.u32 %s187_s28, 4  ;;  %s1734_s29 = int_to_ptr.vmem [resolvable:$true] %s1733_s29 }
  0x1c   : > { %v856_v6 = vld [vmem:[%s2182_s30 + $0x8] sm:$0xf] }
  0x1d   : > { %v1025_v7 = vld [vmem:[%s2182_s30 + $0x8] sm:$0xf] }
  0x1e   : > { %528 = vrot.lane.b32.xlu0 %v518_v3, %s2089_s5  ;;  %524 = vrot.lane.b32.xlu1 %v2186_v2, %s2089_s5  ;;  %v1194_v8 = vld [vmem:[%s2182_s30 + $0x8] sm:$0xf] }
  0x1f   : > { %v1363_v9 = vld [vmem:[%s2182_s30 + $0x8] sm:$0xf] }
  0x20   : > { %v1532_v11 = vld [vmem:[%s2182_s30 + $0x8] sm:$0xf] }
  0x22   : > { %526 = vrot.lane.b32.xlu1 %v2192_v4, %s2089_s5  ;;  %208 = vrot.lane.b32.xlu0 %v2192_v4, %s2088_s4  ;;  %s1731_s5 = scalar_lea.hbm %s2376_s3, %s1939_s27 }
  0x26   : > { %697 = vrot.lane.b32.xlu1 %v687_v5, %s2090_s6  ;;  %695 = vrot.lane.b32.xlu0 %v2192_v4, %s2090_s6 }
  0x2a   : > { %864 = vrot.lane.b32.xlu1 %v2192_v4, %s2091_s7  ;;  %693 = vrot.lane.b32.xlu0 %v2186_v2, %s2090_s6  ;;  %s1717_s6 = scalar_lea.sflag [#allocation3], %s185_s23 }
  0x2e   : > { %862 = vrot.lane.b32.xlu1 %v2186_v2, %s2091_s7  ;;  %866 = vrot.lane.b32.xlu0 %v856_v6, %s2091_s7  ;;  %s2008_s7 = scalar_lea.vmem %s1734_s29, 384 }
  0x2f   : > { %p2009_p12 = scmp.ne.s32.totalorder %s1734_s29, %s2008_s7 }
  0x31   : > { %p2010_p13 = pnand %p2009_p12, %p2158_p4 }
  0x32   : > { %1035 = vrot.lane.b32.xlu1 %v1025_v7, %s2092_s8  ;;  %1033 = vrot.lane.b32.xlu0 %v2192_v4, %s2092_s8 }
  0x33   : > { %p2011_p0 = pneg %p2010_p13 }
  0x36   : > { %1202 = vrot.lane.b32.xlu1 %v2192_v4, %s2093_s9  ;;  %1031 = vrot.lane.b32.xlu0 %v2186_v2, %s2092_s8  ;;  %s2012_s8 = sshll.u32 %s2097_s15, 4  ;;  %s2013_s8 = int_to_ptr.vmem [resolvable:$false] %s2012_s8 }
  0x37   : > { %p2015_p1 = scmp.lt.s32.totalorder %s1734_s29, %s2013_s8 }
  0x3a   : > { %1200 = vrot.lane.b32.xlu1 %v2186_v2, %s2093_s9  ;;  %1204 = vrot.lane.b32.xlu0 %v1194_v8, %s2093_s9  ;;  %s2014_s9 = scalar_lea.vmem %s2013_s8, 768 }
  0x3b   : > { %p2016_p2 = scmp.lt.s32.totalorder %s2014_s9, %s2008_s7 }
  0x3d   : > { %p2017_p3 = por %p2016_p2, %p2015_p1 }
  0x3e   : > { %1373 = vrot.lane.b32.xlu1 %v1363_v9, %s2095_s10  ;;  %1371 = vrot.lane.b32.xlu0 %v2192_v4, %s2095_s10 }
  0x3f   : > { %p2018_p5 = pnand %p2017_p3, %p2011_p0 }
  0x42   : > { %1540 = vrot.lane.b32.xlu1 %v2192_v4, %s2096_s11  ;;  %1369 = vrot.lane.b32.xlu0 %v2186_v2, %s2095_s10 }
  0x46   : > { %1538 = vrot.lane.b32.xlu1 %v2186_v2, %s2096_s11  ;;  %1542 = vrot.lane.b32.xlu0 %v1532_v11, %s2096_s11 }
  0x4a   : > { %1703 = vperm.xlu0 %2006, %v1700_v12  }
  0x8c   : > { %v211_v14 = vpop.permute.xlu0 %210  ;;  %v207_v15 = vpop.permute.xlu1 %206 }
  0x8d   : > { %1893 = vmatpush3.msk.msra.mxu1 %vm219_vm1, %v211_v14 }
  0x8e   : > { %1895 = vmatmul.mubr.msk.f32.vlgmr.msra.gmra.mxu1 %vm215_vm2, %v1818_v13  ;;  %1897 = vmatprep.subr.mxu1 %v2086_v0 }
  0x8f   : > { %1898 = vmatpush3.msk.msra.mxu1 %vm219_vm1, %v199_v1  ;;  %1899 = vmatprep.mubr.msk.f32.mxu1 %vm2087_vm0, %v2086_v0 }
  0x90   : > { %v529_v17 = vpop.permute.xlu0 %528  ;;  %v525_v18 = vpop.permute.xlu1 %524  ;;  %1902 = vmatprep.subr.mxu1 %v2086_v0 }
  0x92   : > { %1900 = vmatmul.mubr.msk.f32.vlgmr.msra.gmra.mxu1 %vm215_vm2, %v200_v16 }
  0x93   : > { %1903 = vmatpush3.msk.msra.mxu1 %vm219_vm1, %v529_v17  ;;  %1904 = vmatprep.mubr.msk.f32.mxu1 %vm2087_vm0, %v2086_v0 }
  0x94   : > { %v527_v20 = vpop.permute.xlu1 %526  ;;  %v209_v21 = vpop.permute.xlu0 %208  ;;  %1907 = vmatprep.subr.mxu1 %v2086_v0 }
  0x95   : > { %v214_v22 = vsel %vm212_vm3, %v209_v21, %v211_v14  ;;  %v213_v23 = vsel %vm212_vm3, %v207_v15, %v209_v21  ;;  %v532_v27 = vsel %vm530_vm4, %v527_v20, %v529_v17  ;;  %v531_v28 = vsel %vm530_vm4, %v525_v18, %v527_v20 }
  0x96   : > { %1819 = vmatprep.subr.msk.mxu0 %vm219_vm1, %v214_v22  ;;  %1905 = vmatmul.mubr.msk.f32.vlgmr.msra.gmra.mxu1 %vm215_vm2, %v1829_v19 }
  0x97   : > { %1820 = vmatpush1.msk.msra.mxu0 %vm219_vm1, %v213_v23  ;;  %1909 = vmatprep.mubr.msk.f32.mxu1 %vm2087_vm0, %v2086_v0 }
  0x98   : > { %v698_v24 = vpop.permute.xlu1 %697  ;;  %1821 = vmatmul.mubr.msk.f32.vlgmr.msra.gmra.mxu0 %vm215_vm2, %v1818_v13  ;;  %1824 = vmatprep.subr.msk.mxu0 %vm219_vm1, %v2192_v4  ;;  %v696_v25 = vpop.permute.xlu0 %695 }
  0x99   : > { %1825 = vmatpush1.msk.msra.mxu0 %vm219_vm1, %v2186_v2  ;;  %1908 = vmatpush3.msk.msra.mxu1 %vm219_vm1, %v698_v24  ;;  %v701_v31 = vsel %vm699_vm5, %v696_v25, %v698_v24 }
  0x9a   : > { %1830 = vmatprep.subr.msk.mxu0 %vm219_vm1, %v532_v27  ;;  %440 = vmatprep.mubr.f32.mxu0 %v2086_v0 }
  0x9b   : > { %1912 = vmatprep.subr.mxu1 %v2086_v0  ;;  %1910 = vmatmul.mubr.msk.f32.vlgmr.msra.gmra.mxu1 %vm215_vm2, %v1835_v26 }
  0x9c   : > { %v865_v29 = vpop.permute.xlu1 %864  ;;  %1826 = vmatmul.mubr.msk.f32.vlgmr.msra.gmra.mxu0 %vm215_vm2, %v200_v16  ;;  %v694_v30 = vpop.permute.xlu0 %693  ;;  %1914 = vmatprep.mubr.msk.f32.mxu1 %vm2087_vm0, %v2086_v0 }
  0x9d   : > { %1831 = vmatpush1.msk.msra.mxu0 %vm219_vm1, %v531_v28  ;;  %606 = vmatprep.mubr.f32.mxu0 %v2086_v0  ;;  %v700_v32 = vsel %vm699_vm5, %v694_v30, %v696_v25 }
  0x9e   : > { %1836 = vmatprep.subr.msk.mxu0 %vm219_vm1, %v701_v31 }
  0xa0   : > { %v863_v33 = vpop.permute.xlu1 %862  ;;  %1832 = vmatmul.mubr.msk.f32.vlgmr.msra.gmra.mxu0 %vm215_vm2, %v1829_v19  ;;  %v867_v34 = vpop.permute.xlu0 %866 }
  0xa1   : > { %1837 = vmatpush1.msk.msra.mxu0 %vm219_vm1, %v700_v32  ;;  %v870_v36 = vsel %vm868_vm6, %v865_v29, %v867_v34  ;;  %1913 = vmatpush3.msk.msra.mxu1 %vm219_vm1, %v867_v34  ;;  %v869_v37 = vsel %vm868_vm6, %v863_v33, %v865_v29 }
  0xa2   : > { %1842 = vmatprep.subr.msk.mxu0 %vm219_vm1, %v870_v36  ;;  %775 = vmatprep.mubr.f32.mxu0 %v2086_v0 }
  0xa3   : > { %1915 = vmatmul.mubr.msk.f32.vlgmr.msra.gmra.mxu1 %vm215_vm2, %v1841_v35  ;;  %1917 = vmatprep.subr.mxu1 %v2086_v0 }
  0xa4   : > { %v1036_v38 = vpop.permute.xlu1 %1035  ;;  %1838 = vmatmul.mubr.msk.f32.vlgmr.msra.gmra.mxu0 %vm215_vm2, %v1835_v26  ;;  %v1034_v39 = vpop.permute.xlu0 %1033  ;;  %1919 = vmatprep.mubr.msk.f32.mxu1 %vm2087_vm0, %v2086_v0 }
  0xa5   : > { %1843 = vmatpush1.msk.msra.mxu0 %vm219_vm1, %v869_v37  ;;  %v1039_v41 = vsel %vm1037_vm7, %v1034_v39, %v1036_v38  ;;  %1918 = vmatpush3.msk.msra.mxu1 %vm219_vm1, %v1036_v38 }
  0xa6   : > { %1848 = vmatprep.subr.msk.mxu0 %vm219_vm1, %v1039_v41  ;;  %944 = vmatprep.mubr.f32.mxu0 %v2086_v0 }
  0xa7   : > { %1920 = vmatmul.mubr.msk.f32.vlgmr.msra.gmra.mxu1 %vm215_vm2, %v1847_v40  ;;  %1922 = vmatprep.subr.mxu1 %v2086_v0 }
  0xa8   : > { %v1203_v42 = vpop.permute.xlu1 %1202  ;;  %1844 = vmatmul.mubr.msk.f32.vlgmr.msra.gmra.mxu0 %vm215_vm2, %v1841_v35  ;;  %v1032_v43 = vpop.permute.xlu0 %1031  ;;  %1924 = vmatprep.mubr.msk.f32.mxu1 %vm2087_vm0, %v2086_v0 }
  0xa9   : > { %v1038_v44 = vsel %vm1037_vm7, %v1032_v43, %v1034_v39  ;;  %1113 = vmatprep.mubr.f32.mxu0 %v2086_v0 }
  0xaa   : > { %1849 = vmatpush1.msk.msra.mxu0 %vm219_vm1, %v1038_v44 }
  0xac   : > { %v1201_v46 = vpop.permute.xlu1 %1200  ;;  %1850 = vmatmul.mubr.msk.f32.vlgmr.msra.gmra.mxu0 %vm215_vm2, %v1847_v40  ;;  %v1205_v47 = vpop.permute.xlu0 %1204 }
  0xad   : > { %v1207_v48 = vsel %vm1206_vm8, %v1201_v46, %v1203_v42  ;;  %v1208_v49 = vsel %vm1206_vm8, %v1203_v42, %v1205_v47  ;;  %1923 = vmatpush3.msk.msra.mxu1 %vm219_vm1, %v1205_v47  ;;  %1282 = vmatprep.mubr.f32.mxu0 %v2086_v0 }
  0xae   : > { %1854 = vmatprep.subr.msk.mxu0 %vm219_vm1, %v1208_v49  ;;  %1925 = vmatmul.mubr.msk.f32.vlgmr.msra.gmra.mxu1 %vm215_vm2, %v1853_v45 }
  0xaf   : > { %1855 = vmatpush1.msk.msra.mxu0 %vm219_vm1, %v1207_v48  ;;  %1927 = vmatprep.subr.mxu1 %v2086_v0 }
  0xb0   : > { %v1374_v51 = vpop.permute.xlu1 %1373  ;;  %1856 = vmatmul.mubr.msk.f32.vlgmr.msra.gmra.mxu0 %vm215_vm2, %v1853_v45  ;;  %v1372_v52 = vpop.permute.xlu0 %1371  ;;  %1929 = vmatprep.mubr.msk.f32.mxu1 %vm2087_vm0, %v2086_v0 }
  0xb1   : > { %v1377_v53 = vsel %vm1375_vm9, %v1372_v52, %v1374_v51  ;;  %1928 = vmatpush3.msk.msra.mxu1 %vm219_vm1, %v1374_v51  ;;  %1451 = vmatprep.mubr.f32.mxu0 %v2086_v0 }
  0xb2   : > { %1860 = vmatprep.subr.msk.mxu0 %vm219_vm1, %v1377_v53  ;;  %1930 = vmatmul.mubr.msk.f32.vlgmr.msra.gmra.mxu1 %vm215_vm2, %v1859_v50 }
  0xb3   : > { %1932 = vmatprep.subr.mxu1 %v2086_v0  ;;  %1934 = vmatprep.mubr.msk.f32.mxu1 %vm2087_vm0, %v2086_v0 }
  0xb4   : > { %v1541_v54 = vpop.permute.xlu1 %1540  ;;  %v1370_v55 = vpop.permute.xlu0 %1369 }
  0xb5   : > { %v1376_v56 = vsel %vm1375_vm9, %v1370_v55, %v1372_v52 }
  0xb6   : > { %1861 = vmatpush1.msk.msra.mxu0 %vm219_vm1, %v1376_v56 }
  0xb7   : > { %1862 = vmatmul.mubr.msk.f32.vlgmr.msra.gmra.mxu0 %vm215_vm2, %v1859_v50 }
  0xb8   : > { %v1539_v58 = vpop.permute.xlu1 %1538  ;;  %v1543_v59 = vpop.permute.xlu0 %1542  ;;  %1620 = vmatprep.mubr.f32.mxu0 %v2086_v0 }
  0xb9   : > { %v1545_v60 = vsel %vm1544_vm10, %v1539_v58, %v1541_v54  ;;  %v1546_v61 = vsel %vm1544_vm10, %v1541_v54, %v1543_v59  ;;  %1933 = vmatpush3.msk.msra.mxu1 %vm219_vm1, %v1543_v59 }
  0xba   : > { %1866 = vmatprep.subr.msk.mxu0 %vm219_vm1, %v1546_v61  ;;  %1935 = vmatmul.mubr.msk.f32.vlgmr.msra.gmra.mxu1 %vm215_vm2, %v1865_v57 }
  0xbb   : > { %1867 = vmatpush1.msk.msra.mxu0 %vm219_vm1, %v1545_v60 }
  0xbc   : > { %1868 = vmatmul.mubr.msk.f32.vlgmr.msra.gmra.mxu0 %vm215_vm2, %v1865_v57 }
  0xc5   : > { %v1704_v49 = vpop.permute.xlu0 %1703 }
 0x14e   : > { %v363_v62 = vpop.f32.mrf.mxu1 }
 0x150   : > { %v1896_v63 = vpop.f32.mrf.mxu1 }
 0x152   : > { %v513_v1 = vpop.f32.mrf.mxu1 }
 0x153   : > { %v514_v14 = vadd.f32 %v513_v1, %v363_v62 }
 0x154   : > { %v1901_v2 = vpop.f32.mrf.mxu1 }
 0x156   : > { %v679_v3 = vpop.f32.mrf.mxu1 }
 0x157   : > { %v685_v19 = vadd.f32 %v679_v3, %v514_v14 }
 0x158   : > { %v292_v4 = vpop.f32.mrf.mxu0  ;;  %v1906_v5 = vpop.f32.mrf.mxu1 }
 0x15a   : > { %v294_v0 = vpop.f32.mrf.mxu0 }
 0x15b   : > { %v848_v6 = vpop.f32.mrf.mxu1 }
 0x15c   : > { %v442_v7 = vpop.f32.mrf.mxu0  ;;  %v854_v23 = vadd.f32 %v848_v6, %v685_v19 }
 0x15d   : > { %v1911_v8 = vpop.f32.mrf.mxu1  ;;  %v443_v26 = vadd.f32 %v442_v7, %v292_v4 }
 0x15e   : > { %v444_v9 = vpop.f32.mrf.mxu0 }
 0x15f   : > { %v445_v28 = vadd.f32 %v444_v9, %v294_v0 }
 0x160   : > { %v608_v10 = vpop.f32.mrf.mxu0 }
 0x161   : > { %v683_v29 = vadd.f32 %v608_v10, %v443_v26 }
 0x162   : > { %v610_v11 = vpop.f32.mrf.mxu0 }
 0x163   : > { %v1017_v12 = vpop.f32.mrf.mxu1  ;;  %v684_v33 = vadd.f32 %v610_v11, %v445_v28 }
 0x164   : > { %v777_v13 = vpop.f32.mrf.mxu0  ;;  %v1023_v30 = vadd.f32 %v1017_v12, %v854_v23 }
 0x165   : > { %v1916_v15 = vpop.f32.mrf.mxu1  ;;  %v852_v34 = vadd.f32 %v777_v13, %v683_v29 }
 0x166   : > { %v779_v16 = vpop.f32.mrf.mxu0 }
 0x167   : > { %v1186_v17 = vpop.f32.mrf.mxu1  ;;  %v853_v36 = vadd.f32 %v779_v16, %v684_v33 }
 0x168   : > { %v946_v18 = vpop.f32.mrf.mxu0  ;;  %v1192_v38 = vadd.f32 %v1186_v17, %v1023_v30 }
 0x169   : > { %v1921_v20 = vpop.f32.mrf.mxu1  ;;  %v1021_v37 = vadd.f32 %v946_v18, %v852_v34 }
 0x16a   : > { %v948_v21 = vpop.f32.mrf.mxu0 }
 0x16b   : > { %v1022_v40 = vadd.f32 %v948_v21, %v853_v36 }
 0x16c   : > { %v1115_v22 = vpop.f32.mrf.mxu0 }
 0x16d   : > { %v1190_v41 = vadd.f32 %v1115_v22, %v1021_v37 }
 0x16e   : > { %v1117_v24 = vpop.f32.mrf.mxu0  ;;  %v1355_v25 = vpop.f32.mrf.mxu1 }
 0x16f   : > { %v1361_v42 = vadd.f32 %v1355_v25, %v1192_v38  ;;  %v1191_v44 = vadd.f32 %v1117_v24, %v1022_v40 }
 0x170   : > { %v1926_v27 = vpop.f32.mrf.mxu1  ;;  %v1284_v31 = vpop.f32.mrf.mxu0 }
 0x171   : > { %v1359_v45 = vadd.f32 %v1284_v31, %v1190_v41 }
 0x172   : > { %v1524_v32 = vpop.f32.mrf.mxu1  ;;  %v1286_v39 = vpop.f32.mrf.mxu0 }
 0x173   : > { %v1530_v46 = vadd.f32 %v1524_v32, %v1361_v42  ;;  %v1360_v50 = vadd.f32 %v1286_v39, %v1191_v44 }
 0x174   : > { %v1931_v35 = vpop.f32.mrf.mxu1 }
 0x177   : > { %v1453_v43 = vpop.f32.mrf.mxu0 }
 0x178   : > { %v1528_v51 = vadd.f32 %v1453_v43, %v1359_v45 }
 0x179   : > { %v1455_v47 = vpop.f32.mrf.mxu0 }
 0x17a   : > { %v1693_v48 = vpop.f32.mrf.mxu1  ;;  %v1529_v55 = vadd.f32 %v1455_v47, %v1360_v50 }
 0x17b   : > { %v1699_v52 = vadd.f32 %v1693_v48, %v1530_v46 }
 0x17c   : > { %v1622_v53 = vpop.f32.mrf.mxu0  ;;  %v1936_v54 = vpop.f32.mrf.mxu1 }
 0x17d   : > { %v1697_v56 = vadd.f32 %v1622_v53, %v1528_v51  ;;  %v1708_v57 = vadd.f32 %v1704_v49, %v1699_v52 }
 0x17e   : > { %v1624_v58 = vpop.f32.mrf.mxu0 }
 0x17f   : > { %v1706_v59 = vadd.f32 %v1704_v49, %v1697_v56  ;;  %v1711_v60 = vmax.f32 %v1708_v57, 0.0  ;;  %v1698_v61 = vadd.f32 %v1624_v58, %v1529_v55 }
 0x181   : > { %v1709_v62 = vmax.f32 %v1706_v59, 0.0  ;;  %1715 = vst.msk [vmem:[%s187_s28 + $0x10] sm:$0xff] %vm1714_vm11, %v1711_v60  ;;  %v1707_v63 = vadd.f32 %v1704_v49, %v1698_v61 }
 0x183   : > { %1712 = vst [vmem:[%s187_s28] sm:$0xff] %v1709_v62  ;;  %v1710_v1 = vmax.f32 %v1707_v63, 0.0 }
 0x185   : > { %1713 = vst [vmem:[%s187_s28 + $0x8] sm:$0xff] %v1710_v1 }
 0x186   : > { %2021 = shalt.err (!%p2018_p5)
}
 0x187   : > { %s2022_s10 = scalar_lea.hbm %s1731_s5, 384  ;;  %s2026_s19 = scalar_lea.hbm %s2376_s3, 768 }
 0x188   : > { %p2023_p6 = scmp.ne.s32.totalorder %s1731_s5, %s2022_s10  ;;  %p2027_p10 = scmp.lt.s32.totalorder %s1731_s5, %s2376_s3 }
 0x189   : > { %p2028_p11 = scmp.lt.s32.totalorder %s2026_s19, %s2022_s10 }
 0x18a   : > { %p2024_p7 = pnand %p2023_p6, %p2158_p4 }
 0x18b   : > { %p2029_p12 = por %p2028_p11, %p2027_p10 }
 0x18c   : > { %p2025_p9 = pneg %p2024_p7 }
 0x18e   : > { %p2030_p13 = pnand %p2029_p12, %p2025_p9 }
 0x190   : > { %2033 = shalt.err (!%p2030_p13)
}
 0x191   : > { %1940 = dma.vmem_to_hbm [thread:$0]  (%p2158_p4), %s1734_s29, 384, %s1731_s5, %s1717_s6  }
 0x192 PF: > { %p1946_p0 = scmp.ge.s32.totalorder %s2084_s17, 2  ;;  %s1745_s26 = sand.u32 1, %s2064_s12  }
 0x193   : > { %s1746_s27 = scalar_lea.sflag [#allocation3], %s1745_s26 }
 0x194   : > { %p1943_p1 = pnand %p1946_p0, %p2165_p8 }
 0x196   : > { %p1944_p2 = pneg %p1943_p1 }
 0x198   : > { %2059 = dma.done.wait (%p1944_p2), %s1746_s27, 384  }
 0x199   : > { %2061 = vsyncadd (%p1944_p2), %s1746_s27, 4294966912  ;;  %s16_s17 = sadd.s32 1, %s2084_s17   ;;  %s2379_s12 = smov %s2068_s13 }
 0x19a   : > { %p13_p3 = scmp.ge.s32.totalorder %s16_s17, 4   ;;  %s2380_s13 = smov %s2072_s14 }
 0x19b   : > { %s2381_s14 = smov %s2171_s25  ;;  %s2382_s15 = smov %s2080_s16 }
 0x19c   : > { %s2383_s16 = smov %s2385_s20  ;;  %15 = sbr.rel (!%p13_p3) target bundleno = 4 (0x4), region = 75 }
 0x1a1   :  { %1751 = vsyncpa [#allocation3], 1 }
 0x1a2   :  { %1753 = vsyncpa [#allocation3 + $0x1], 1 }

</bundles_post_ra>
